<compile_context>
chip_gen: v7x
topology: tpu7x:2x2x1
jax: 0.10.0
libtpu: 0.0.40
codegen_flags: <defaults>
</compile_context>

<pallas_src>
import numpy as np
import jax
import jax.numpy as jnp
from jax import lax
from jax.experimental import pallas as pl
from jax.experimental.pallas import tpu as pltpu

# ---------------- cfg.TRAIN constants (faster-rcnn style) -------------------
FEAT_STRIDE = 16
RPN_NEGATIVE_OVERLAP = 0.3
RPN_POSITIVE_OVERLAP = 0.7
RPN_CLOBBER_POSITIVES = False
RPN_MAX_LABELS = 32
RPN_FG_LABELS_FRACTION = 0.5


# --------------------------- anchor generation (glue) -----------------------
def _generate_base_anchors(base_size, ratios, scales):
    """Standard generate_anchors(): ratio enum then scale enum."""
    w = h = float(base_size)
    x_ctr = 0.5 * (w - 1.0)
    y_ctr = 0.5 * (h - 1.0)
    size = w * h
    out = []
    for r in ratios:
        ws = np.round(np.sqrt(size / r))
        hs = np.round(ws * r)
        for s in scales:
            wss = ws * s
            hss = hs * s
            out.append([x_ctr - 0.5 * (wss - 1.0),
                        y_ctr - 0.5 * (hss - 1.0),
                        x_ctr + 0.5 * (wss - 1.0),
                        y_ctr + 0.5 * (hss - 1.0)])
    return np.asarray(out, dtype=np.float32)


def _generate_all_anchors(feature_h, feature_w, base_anchors):
    """All shifted anchors ordered (h, w, a) -> (H*W*A, 4)."""
    shift_x = np.arange(feature_w, dtype=np.float32) * FEAT_STRIDE
    shift_y = np.arange(feature_h, dtype=np.float32) * FEAT_STRIDE
    sx, sy = np.meshgrid(shift_x, shift_y)                       # (H, W)
    shifts = np.stack([sx.ravel(), sy.ravel(), sx.ravel(), sy.ravel()], axis=1)
    all_anchors = (shifts[:, None, :] + base_anchors[None, :, :]).reshape(-1, 4)
    return all_anchors.astype(np.float32)


# ------------------------------ Pallas kernel --------------------------------
def _anchor_target_kernel(gt_ref, anch_ref, out_ref):
    # gt_ref:   (B, K*5) f32 in SMEM; per gt box: x1, y1, x2, y2, cls
    # anch_ref: (16, N)  f32 in VMEM; precomputed, batch-invariant anchor rows:
    #           0:x1 1:y1 2:x2 3:y2 4:area 5:cx 6:cy 7:inside
    #           8:1/w 9:1/h 10:log w 11:log h 12:zero-area 13..15: pad
    # out_ref:  (1, 8, N) f32; rows: label, dx, dy, dw, dh, pad x3
    b = pl.program_id(0)
    N = anch_ref.shape[1]
    K = gt_ref.shape[1] // 5

    ax1 = anch_ref[0:1, :]
    ay1 = anch_ref[1:2, :]
    ax2 = anch_ref[2:3, :]
    ay2 = anch_ref[3:4, :]
    a_area = anch_ref[4:5, :]
    ex_cx = anch_ref[5:6, :]
    ex_cy = anch_ref[6:7, :]
    inside = anch_ref[7:8, :] > 0.5
    inv_a_w = anch_ref[8:9, :]
    inv_a_h = anch_ref[9:10, :]
    log_a_w = anch_ref[10:11, :]
    log_a_h = anch_ref[11:12, :]
    an_zero = anch_ref[12:13, :] > 0.5

    # online reduction state -- only (1, N) vectors, no (K, N) temporaries
    max_ov = jnp.full((1, N), -1e30, dtype=jnp.float32)
    keep = jnp.zeros((1, N), dtype=jnp.bool_)
    bx1 = jnp.zeros((1, N), dtype=jnp.float32)
    by1 = jnp.zeros((1, N), dtype=jnp.float32)
    bx2 = jnp.zeros((1, N), dtype=jnp.float32)
    by2 = jnp.zeros((1, N), dtype=jnp.float32)

    for k in range(K):                               # small K, unrolled at trace time
        gx1 = gt_ref[b, 5 * k + 0]
        gy1 = gt_ref[b, 5 * k + 1]
        gx2 = gt_ref[b, 5 * k + 2]
        gy2 = gt_ref[b, 5 * k + 3]
        g_w = gx2 - gx1 + 1.0
        g_h = gy2 - gy1 + 1.0
        g_area = g_w * g_h
        gt_zero = jnp.logical_and(g_w == 1.0, g_h == 1.0)        # padded gt box

        # ---- bbox_overlaps_batch row k (IoU against all anchors) ----
        iw = jnp.maximum(jnp.minimum(ax2, gx2) - jnp.maximum(ax1, gx1) + 1.0, 0.0)
        ih = jnp.maximum(jnp.minimum(ay2, gy2) - jnp.maximum(ay1, gy1) + 1.0, 0.0)
        inter = iw * ih
        ua = a_area + (g_area - inter)
        ov = inter * pl.reciprocal(ua, approx=True)              # EUP, frees VALU
        ov = jnp.where(gt_zero, 0.0, ov)                         # padded gt -> 0
        ov = jnp.where(an_zero, -1.0, ov)                        # zero-area anchor -> -1

        # ---- online anchor-side max / argmax coords (min-index tie-break) ----
        better = ov > max_ov
        max_ov = jnp.where(better, ov, max_ov)
        bx1 = jnp.where(better, gx1, bx1)
        by1 = jnp.where(better, gy1, by1)
        bx2 = jnp.where(better, gx2, bx2)
        by2 = jnp.where(better, gy2, by2)

        # ---- gt-side max over *inside* anchors -> keep (best anchor per gt) ----
        ov_in = jnp.where(inside, ov, -10.0)
        gt_max = jnp.max(ov_in, axis=1, keepdims=True)           # (1, 1)
        gt_max = jnp.where(gt_max == 0.0, 1e-5, gt_max)
        keep = jnp.logical_or(keep, ov_in == gt_max)

    # ------------------ label assignment ------------------
    labels = jnp.full((1, N), -1.0, dtype=jnp.float32)
    if not RPN_CLOBBER_POSITIVES:
        labels = jnp.where(max_ov < RPN_NEGATIVE_OVERLAP, 0.0, labels)
    labels = jnp.where(keep, 1.0, labels)
    labels = jnp.where(max_ov >= RPN_POSITIVE_OVERLAP, 1.0, labels)
    if RPN_CLOBBER_POSITIVES:
        labels = jnp.where(max_ov < RPN_NEGATIVE_OVERLAP, 0.0, labels)
    labels = jnp.where(inside, labels, -1.0)                     # _unmap fill=-1

    # ------------------ bbox_transform_batch targets ------------------
    b_w = bx2 - bx1 + 1.0
    b_h = by2 - by1 + 1.0
    b_cx = bx1 + 0.5 * b_w
    b_cy = by1 + 0.5 * b_h
    dx = (b_cx - ex_cx) * inv_a_w
    dy = (b_cy - ex_cy) * inv_a_h
    dw = jnp.log(b_w) - log_a_w
    dh = jnp.log(b_h) - log_a_h

    # per-row stores: no sublane concat relayout, lane-dense writes
    out_ref[0, 0:1, :] = labels
    out_ref[0, 1:2, :] = jnp.where(inside, dx, 0.0)              # _unmap fill=0
    out_ref[0, 2:3, :] = jnp.where(inside, dy, 0.0)
    out_ref[0, 3:4, :] = jnp.where(inside, dw, 0.0)
    out_ref[0, 4:5, :] = jnp.where(inside, dh, 0.0)
    out_ref[0, 5:8, :] = jnp.zeros((3, N), dtype=jnp.float32)    # pad rows


def _run_kernel(gt_flat, anch_feat):
    """gt_flat (B, K*5), anch_feat (16, N_pad) -> out (B, 8, N_pad)."""
    B = gt_flat.shape[0]
    N_pad = anch_feat.shape[1]
    return pl.pallas_call(
        _anchor_target_kernel,
        out_shape=jax.ShapeDtypeStruct((B, 8, N_pad), jnp.float32),
        grid_spec=pltpu.PrefetchScalarGridSpec(
            num_scalar_prefetch=0,
            grid=(B,),
            in_specs=[
                # gt boxes: tiny, whole array in SMEM, scalar-indexed per k
                pl.BlockSpec(memory_space=pltpu.MemorySpace.SMEM),
                # anchor features: batch-invariant, resident block
                pl.BlockSpec((16, N_pad), lambda b: (0, 0)),
            ],
            out_specs=pl.BlockSpec((1, 8, N_pad), lambda b: (b, 0, 0)),
        ),
        compiler_params=pltpu.CompilerParams(
            dimension_semantics=("parallel",)),                  # megacore on v7x
    )(gt_flat, anch_feat)


# ------------------------------ full forward ---------------------------------
def anchor_target_layer(cls_score_shape, gt_boxes, im_info, anchors_per_point,
                        ratios, scales, rng_key):
    """JAX equivalent of _AnchorTargetLayer.forward."""
    B, _, H, W = cls_score_shape
    A = anchors_per_point
    assert len(ratios) * len(scales) == A

    base = _generate_base_anchors(16, ratios, scales)
    anchors = _generate_all_anchors(H, W, base)                  # (N, 4), (h, w, a) order
    N = anchors.shape[0]
    N_pad = ((N + 127) // 128) * 128                             # lane-dense padding

    # inside-image mask (mirrors idx_inside gather via masking)
    im_h = int(np.asarray(im_info)[0, 0])
    im_w = int(np.asarray(im_info)[0, 1])
    inside = ((anchors[:, 0] >= 0) & (anchors[:, 1] >= 0) &
              (anchors[:, 2] < im_w) & (anchors[:, 3] < im_h))

    pad = N_pad - N
    if pad:
        anchors_p = np.concatenate([anchors, np.zeros((pad, 4), np.float32)], axis=0)
        inside_p = np.concatenate([inside, np.zeros(pad, dtype=bool)])
    else:
        anchors_p, inside_p = anchors, inside

    # precompute batch-invariant anchor features once (glue)
    x1, y1 = anchors_p[:, 0], anchors_p[:, 1]
    x2, y2 = anchors_p[:, 2], anchors_p[:, 3]
    a_w = x2 - x1 + 1.0
    a_h = y2 - y1 + 1.0
    a_area = a_w * a_h
    ex_cx = x1 + 0.5 * a_w
    ex_cy = y1 + 0.5 * a_h
    an_zero = (a_w == 1.0) & (a_h == 1.0)
    zeros = np.zeros_like(x1)
    anch_feat = jnp.asarray(np.stack(
        [x1, y1, x2, y2, a_area, ex_cx, ex_cy,
         inside_p.astype(np.float32),
         1.0 / a_w, 1.0 / a_h, np.log(a_w), np.log(a_h),
         an_zero.astype(np.float32), zeros, zeros, zeros],
        axis=0).astype(np.float32))                              # (16, N_pad)

    gt_boxes = jnp.asarray(gt_boxes, dtype=jnp.float32)
    Bg, K, _ = gt_boxes.shape
    gt_flat = gt_boxes.reshape(Bg, K * 5)

    out = _run_kernel(gt_flat, anch_feat)                        # (B, 8, N_pad)
    out = out[:, :, :N]
    labels = out[:, 0, :]                                        # (B, N)
    bbox_targets = jnp.transpose(out[:, 1:5, :], (0, 2, 1))      # (B, N, 4)

    # ---------------- random fg/bg subsampling (glue, top_k instead of sorts) -
    # TODO(synk): torch.randperm's RNG stream differs from jax.random; the
    # random subset selected is equivalent in distribution, not bit-identical.
    num_fg = int(RPN_FG_LABELS_FRACTION * RPN_MAX_LABELS)
    kf, kb = jax.random.split(rng_key)

    fg = labels == 1.0
    keys_f = jnp.where(fg, jax.random.uniform(kf, labels.shape), -jnp.inf)
    thresh_f = lax.top_k(keys_f, num_fg)[0][:, num_fg - 1:num_fg]     # (B, 1)
    labels = jnp.where(fg & (keys_f < thresh_f), -1.0, labels)

    num_bg = RPN_MAX_LABELS - jnp.sum((labels == 1.0).astype(jnp.int32),
                                      axis=1, keepdims=True)          # (B, 1)
    bg = labels == 0.0
    keys_b = jnp.where(bg, jax.random.uniform(kb, labels.shape), -jnp.inf)
    top_b = lax.top_k(keys_b, RPN_MAX_LABELS)[0]                      # (B, 32)
    idx_b = jnp.clip(num_bg - 1, 0, RPN_MAX_LABELS - 1)
    thresh_b = jnp.take_along_axis(top_b, idx_b, axis=1)              # (B, 1)
    labels = jnp.where(bg & (keys_b < thresh_b), -1.0, labels)

    # pos_idx (torch returns a dynamic-length tensor; here padded with -1)
    pos_idx = jnp.nonzero(labels.reshape(-1) == 1.0,
                          size=B * num_fg, fill_value=-1)[0]

    labels_out = labels.reshape(B, H, W, A).transpose(0, 3, 1, 2)     # (B, A, H, W)
    return labels_out, bbox_targets, pos_idx


# ------------------------------------ main ------------------------------------
if __name__ == "__main__":
    key = jax.random.PRNGKey(0)
    B, H, W = 2, 16, 16
    A = 4                              # anchors_per_point
    ratios = (0.5, 2.0)
    scales = (4.0, 8.0)
    K = 8                              # (padded) gt boxes per image

    cls_score_shape = (B, 2 * A, H, W)          # NCHW rpn_cls_score (shape only)
    im_info = np.array([[200.0, 220.0, 1.0],
                        [200.0, 220.0, 1.0]], dtype=np.float32)

    # deterministic gt boxes inside the image, last 3 per image are zero padding
    k1, k2, k3, ksub = jax.random.split(key, 4)
    x1 = jax.random.uniform(k1, (B, K), minval=0.0, maxval=140.0)
    y1 = jax.random.uniform(k2, (B, K), minval=0.0, maxval=120.0)
    wh = jax.random.uniform(k3, (B, K, 2), minval=30.0, maxval=70.0)
    x2 = jnp.minimum(x1 + wh[..., 0], im_info[0, 1] - 1.0)
    y2 = jnp.minimum(y1 + wh[..., 1], im_info[0, 0] - 1.0)
    cls = jnp.ones((B, K), dtype=jnp.float32)
    gt_boxes = jnp.stack([x1, y1, x2, y2, cls], axis=-1)
    pad_mask = (jnp.arange(K) < K - 3)[None, :, None].astype(jnp.float32)
    gt_boxes = gt_boxes * pad_mask                              # (B, K, 5)

    labels, bbox_targets, pos_idx = anchor_target_layer(
        cls_score_shape, gt_boxes, im_info, A, ratios, scales, ksub)
    jax.block_until_ready((labels, bbox_targets, pos_idx))

    # light sanity checks
    assert labels.shape == (B, A, H, W)
    assert bbox_targets.shape == (B, H * W * A, 4)
    vals = np.unique(np.asarray(labels))
    assert set(vals.tolist()).issubset({-1.0, 0.0, 1.0})
    per_batch_used = np.asarray((labels >= 0).sum(axis=(1, 2, 3)))
    assert np.all(per_batch_used <= RPN_MAX_LABELS)
    assert np.all(np.isfinite(np.asarray(bbox_targets)))

    print("KERNEL_OK")
</pallas_src>

<mosaic_0001>
module attributes {stable_mosaic.version = 11 : i64} {
  func.func @_anchor_target_kernel(%arg0: i32, %arg1: memref<2x40xf32, #tpu.memory_space<smem>>, %arg2: memref<16x1024xf32, #tpu.memory_space<vmem>>, %arg3: memref<1x8x1024xf32, #tpu.memory_space<vmem>>) attributes {dimension_semantics = [#tpu.dimension_semantics<parallel>], iteration_bounds = array<i64: 2>, scalar_prefetch = 0 : i64, scratch_operands = 0 : i64, tpu.core_type = #tpu.core_type<tc>, window_params = [{transform_indices = @transform_0, window_bounds = array<i64: 2, 40>}, {pipeline_mode = #tpu.pipeline_mode<synchronous>, transform_indices = @transform_1, window_bounds = array<i64: 16, 1024>}, {transform_indices = @transform_2, window_bounds = array<i64: 1, 8, 1024>}]} {
    %c0 = arith.constant 0 : index
    %c0_0 = arith.constant 0 : index
    %0 = vector.load %arg2[%c0, %c0_0] : memref<16x1024xf32, #tpu.memory_space<vmem>>, vector<1x1024xf32>
    %c1 = arith.constant 1 : index
    %c0_1 = arith.constant 0 : index
    %1 = vector.load %arg2[%c1, %c0_1] : memref<16x1024xf32, #tpu.memory_space<vmem>>, vector<1x1024xf32>
    %c2 = arith.constant 2 : index
    %c0_2 = arith.constant 0 : index
    %2 = vector.load %arg2[%c2, %c0_2] : memref<16x1024xf32, #tpu.memory_space<vmem>>, vector<1x1024xf32>
    %c3 = arith.constant 3 : index
    %c0_3 = arith.constant 0 : index
    %3 = vector.load %arg2[%c3, %c0_3] : memref<16x1024xf32, #tpu.memory_space<vmem>>, vector<1x1024xf32>
    %c4 = arith.constant 4 : index
    %c0_4 = arith.constant 0 : index
    %4 = vector.load %arg2[%c4, %c0_4] : memref<16x1024xf32, #tpu.memory_space<vmem>>, vector<1x1024xf32>
    %c5 = arith.constant 5 : index
    %c0_5 = arith.constant 0 : index
    %5 = vector.load %arg2[%c5, %c0_5] : memref<16x1024xf32, #tpu.memory_space<vmem>>, vector<1x1024xf32>
    %c6 = arith.constant 6 : index
    %c0_6 = arith.constant 0 : index
    %6 = vector.load %arg2[%c6, %c0_6] : memref<16x1024xf32, #tpu.memory_space<vmem>>, vector<1x1024xf32>
    %c7 = arith.constant 7 : index
    %c0_7 = arith.constant 0 : index
    %7 = vector.load %arg2[%c7, %c0_7] : memref<16x1024xf32, #tpu.memory_space<vmem>>, vector<1x1024xf32>
    %cst = arith.constant 5.000000e-01 : f32
    %8 = vector.broadcast %cst : f32 to vector<1x1024xf32>
    %9 = arith.cmpf ogt, %7, %8 : vector<1x1024xf32>
    %c8 = arith.constant 8 : index
    %c0_8 = arith.constant 0 : index
    %10 = vector.load %arg2[%c8, %c0_8] : memref<16x1024xf32, #tpu.memory_space<vmem>>, vector<1x1024xf32>
    %c9 = arith.constant 9 : index
    %c0_9 = arith.constant 0 : index
    %11 = vector.load %arg2[%c9, %c0_9] : memref<16x1024xf32, #tpu.memory_space<vmem>>, vector<1x1024xf32>
    %c10 = arith.constant 10 : index
    %c0_10 = arith.constant 0 : index
    %12 = vector.load %arg2[%c10, %c0_10] : memref<16x1024xf32, #tpu.memory_space<vmem>>, vector<1x1024xf32>
    %c11 = arith.constant 11 : index
    %c0_11 = arith.constant 0 : index
    %13 = vector.load %arg2[%c11, %c0_11] : memref<16x1024xf32, #tpu.memory_space<vmem>>, vector<1x1024xf32>
    %c12 = arith.constant 12 : index
    %c0_12 = arith.constant 0 : index
    %14 = vector.load %arg2[%c12, %c0_12] : memref<16x1024xf32, #tpu.memory_space<vmem>>, vector<1x1024xf32>
    %cst_13 = arith.constant 5.000000e-01 : f32
    %15 = vector.broadcast %cst_13 : f32 to vector<1x1024xf32>
    %16 = arith.cmpf ogt, %14, %15 : vector<1x1024xf32>
    %cst_14 = arith.constant -1.000000e+30 : f32
    %17 = vector.broadcast %cst_14 : f32 to vector<1x1024xf32>
    %false = arith.constant false
    %18 = vector.broadcast %false : i1 to vector<1x1024xi1>
    %cst_15 = arith.constant 0.000000e+00 : f32
    %19 = vector.broadcast %cst_15 : f32 to vector<1x1024xf32>
    %cst_16 = arith.constant 0.000000e+00 : f32
    %20 = vector.broadcast %cst_16 : f32 to vector<1x1024xf32>
    %cst_17 = arith.constant 0.000000e+00 : f32
    %21 = vector.broadcast %cst_17 : f32 to vector<1x1024xf32>
    %cst_18 = arith.constant 0.000000e+00 : f32
    %22 = vector.broadcast %cst_18 : f32 to vector<1x1024xf32>
    %23 = arith.index_cast %arg0 : i32 to index
    %c0_19 = arith.constant 0 : index
    %24 = memref.load %arg1[%23, %c0_19] : memref<2x40xf32, #tpu.memory_space<smem>>
    %25 = arith.index_cast %arg0 : i32 to index
    %c1_20 = arith.constant 1 : index
    %26 = memref.load %arg1[%25, %c1_20] : memref<2x40xf32, #tpu.memory_space<smem>>
    %27 = arith.index_cast %arg0 : i32 to index
    %c2_21 = arith.constant 2 : index
    %28 = memref.load %arg1[%27, %c2_21] : memref<2x40xf32, #tpu.memory_space<smem>>
    %29 = arith.index_cast %arg0 : i32 to index
    %c3_22 = arith.constant 3 : index
    %30 = memref.load %arg1[%29, %c3_22] : memref<2x40xf32, #tpu.memory_space<smem>>
    %31 = arith.subf %28, %24 : f32
    %cst_23 = arith.constant 1.000000e+00 : f32
    %32 = arith.addf %31, %cst_23 : f32
    %33 = arith.subf %30, %26 : f32
    %cst_24 = arith.constant 1.000000e+00 : f32
    %34 = arith.addf %33, %cst_24 : f32
    %35 = arith.mulf %32, %34 : f32
    %cst_25 = arith.constant 1.000000e+00 : f32
    %36 = arith.cmpf oeq, %32, %cst_25 : f32
    %cst_26 = arith.constant 1.000000e+00 : f32
    %37 = arith.cmpf oeq, %34, %cst_26 : f32
    %38 = arith.andi %36, %37 : i1
    %39 = vector.broadcast %28 : f32 to vector<1x1024xf32>
    %40 = arith.minimumf %2, %39 : vector<1x1024xf32>
    %41 = vector.broadcast %24 : f32 to vector<1x1024xf32>
    %42 = arith.maximumf %0, %41 : vector<1x1024xf32>
    %43 = arith.subf %40, %42 : vector<1x1024xf32>
    %cst_27 = arith.constant 1.000000e+00 : f32
    %44 = vector.broadcast %cst_27 : f32 to vector<1x1024xf32>
    %45 = arith.addf %43, %44 : vector<1x1024xf32>
    %cst_28 = arith.constant 0.000000e+00 : f32
    %46 = vector.broadcast %cst_28 : f32 to vector<1x1024xf32>
    %47 = arith.maximumf %45, %46 : vector<1x1024xf32>
    %48 = vector.broadcast %30 : f32 to vector<1x1024xf32>
    %49 = arith.minimumf %3, %48 : vector<1x1024xf32>
    %50 = vector.broadcast %26 : f32 to vector<1x1024xf32>
    %51 = arith.maximumf %1, %50 : vector<1x1024xf32>
    %52 = arith.subf %49, %51 : vector<1x1024xf32>
    %cst_29 = arith.constant 1.000000e+00 : f32
    %53 = vector.broadcast %cst_29 : f32 to vector<1x1024xf32>
    %54 = arith.addf %52, %53 : vector<1x1024xf32>
    %cst_30 = arith.constant 0.000000e+00 : f32
    %55 = vector.broadcast %cst_30 : f32 to vector<1x1024xf32>
    %56 = arith.maximumf %54, %55 : vector<1x1024xf32>
    %57 = arith.mulf %47, %56 : vector<1x1024xf32>
    %58 = vector.broadcast %35 : f32 to vector<1x1024xf32>
    %59 = arith.subf %58, %57 : vector<1x1024xf32>
    %60 = arith.addf %4, %59 : vector<1x1024xf32>
    %61 = tpu.reciprocal %60 {approx = true} : vector<1x1024xf32> -> vector<1x1024xf32>
    %62 = arith.mulf %57, %61 : vector<1x1024xf32>
    %cst_31 = arith.constant 0.000000e+00 : f32
    %63 = vector.broadcast %cst_31 : f32 to vector<1x1024xf32>
    %64 = arith.select %38, %63, %62 : vector<1x1024xf32>
    %cst_32 = arith.constant -1.000000e+00 : f32
    %65 = vector.broadcast %cst_32 : f32 to vector<1x1024xf32>
    %66 = arith.select %16, %65, %64 : vector<1x1024xi1>, vector<1x1024xf32>
    %67 = arith.cmpf ogt, %66, %17 : vector<1x1024xf32>
    %68 = arith.select %67, %66, %17 : vector<1x1024xi1>, vector<1x1024xf32>
    %69 = vector.broadcast %24 : f32 to vector<1x1024xf32>
    %70 = arith.select %67, %69, %19 : vector<1x1024xi1>, vector<1x1024xf32>
    %71 = vector.broadcast %26 : f32 to vector<1x1024xf32>
    %72 = arith.select %67, %71, %20 : vector<1x1024xi1>, vector<1x1024xf32>
    %73 = vector.broadcast %28 : f32 to vector<1x1024xf32>
    %74 = arith.select %67, %73, %21 : vector<1x1024xi1>, vector<1x1024xf32>
    %75 = vector.broadcast %30 : f32 to vector<1x1024xf32>
    %76 = arith.select %67, %75, %22 : vector<1x1024xi1>, vector<1x1024xf32>
    %cst_33 = arith.constant -1.000000e+01 : f32
    %77 = vector.broadcast %cst_33 : f32 to vector<1x1024xf32>
    %78 = arith.select %9, %66, %77 : vector<1x1024xi1>, vector<1x1024xf32>
    %cst_34 = arith.constant dense<0xFF800000> : vector<1xf32>
    %79 = vector.multi_reduction <maximumf>, %78, %cst_34 [1] : vector<1x1024xf32> to vector<1xf32>
    %80 = vector.shape_cast %79 : vector<1xf32> to vector<1x1xf32>
    %cst_35 = arith.constant 0.000000e+00 : f32
    %81 = vector.broadcast %cst_35 : f32 to vector<1x1xf32>
    %82 = arith.cmpf oeq, %80, %81 : vector<1x1xf32>
    %cst_36 = arith.constant 9.99999974E-6 : f32
    %83 = vector.broadcast %cst_36 : f32 to vector<1x1xf32>
    %84 = arith.select %82, %83, %80 : vector<1x1xi1>, vector<1x1xf32>
    %85 = vector.broadcast %84 : vector<1x1xf32> to vector<1x1024xf32>
    %86 = arith.cmpf oeq, %78, %85 : vector<1x1024xf32>
    %87 = arith.ori %18, %86 : vector<1x1024xi1>
    %88 = arith.index_cast %arg0 : i32 to index
    %c5_37 = arith.constant 5 : index
    %89 = memref.load %arg1[%88, %c5_37] : memref<2x40xf32, #tpu.memory_space<smem>>
    %90 = arith.index_cast %arg0 : i32 to index
    %c6_38 = arith.constant 6 : index
    %91 = memref.load %arg1[%90, %c6_38] : memref<2x40xf32, #tpu.memory_space<smem>>
    %92 = arith.index_cast %arg0 : i32 to index
    %c7_39 = arith.constant 7 : index
    %93 = memref.load %arg1[%92, %c7_39] : memref<2x40xf32, #tpu.memory_space<smem>>
    %94 = arith.index_cast %arg0 : i32 to index
    %c8_40 = arith.constant 8 : index
    %95 = memref.load %arg1[%94, %c8_40] : memref<2x40xf32, #tpu.memory_space<smem>>
    %96 = arith.subf %93, %89 : f32
    %cst_41 = arith.constant 1.000000e+00 : f32
    %97 = arith.addf %96, %cst_41 : f32
    %98 = arith.subf %95, %91 : f32
    %cst_42 = arith.constant 1.000000e+00 : f32
    %99 = arith.addf %98, %cst_42 : f32
    %100 = arith.mulf %97, %99 : f32
    %cst_43 = arith.constant 1.000000e+00 : f32
    %101 = arith.cmpf oeq, %97, %cst_43 : f32
    %cst_44 = arith.constant 1.000000e+00 : f32
    %102 = arith.cmpf oeq, %99, %cst_44 : f32
    %103 = arith.andi %101, %102 : i1
    %104 = vector.broadcast %93 : f32 to vector<1x1024xf32>
    %105 = arith.minimumf %2, %104 : vector<1x1024xf32>
    %106 = vector.broadcast %89 : f32 to vector<1x1024xf32>
    %107 = arith.maximumf %0, %106 : vector<1x1024xf32>
    %108 = arith.subf %105, %107 : vector<1x1024xf32>
    %cst_45 = arith.constant 1.000000e+00 : f32
    %109 = vector.broadcast %cst_45 : f32 to vector<1x1024xf32>
    %110 = arith.addf %108, %109 : vector<1x1024xf32>
    %cst_46 = arith.constant 0.000000e+00 : f32
    %111 = vector.broadcast %cst_46 : f32 to vector<1x1024xf32>
    %112 = arith.maximumf %110, %111 : vector<1x1024xf32>
    %113 = vector.broadcast %95 : f32 to vector<1x1024xf32>
    %114 = arith.minimumf %3, %113 : vector<1x1024xf32>
    %115 = vector.broadcast %91 : f32 to vector<1x1024xf32>
    %116 = arith.maximumf %1, %115 : vector<1x1024xf32>
    %117 = arith.subf %114, %116 : vector<1x1024xf32>
    %cst_47 = arith.constant 1.000000e+00 : f32
    %118 = vector.broadcast %cst_47 : f32 to vector<1x1024xf32>
    %119 = arith.addf %117, %118 : vector<1x1024xf32>
    %cst_48 = arith.constant 0.000000e+00 : f32
    %120 = vector.broadcast %cst_48 : f32 to vector<1x1024xf32>
    %121 = arith.maximumf %119, %120 : vector<1x1024xf32>
    %122 = arith.mulf %112, %121 : vector<1x1024xf32>
    %123 = vector.broadcast %100 : f32 to vector<1x1024xf32>
    %124 = arith.subf %123, %122 : vector<1x1024xf32>
    %125 = arith.addf %4, %124 : vector<1x1024xf32>
    %126 = tpu.reciprocal %125 {approx = true} : vector<1x1024xf32> -> vector<1x1024xf32>
    %127 = arith.mulf %122, %126 : vector<1x1024xf32>
    %cst_49 = arith.constant 0.000000e+00 : f32
    %128 = vector.broadcast %cst_49 : f32 to vector<1x1024xf32>
    %129 = arith.select %103, %128, %127 : vector<1x1024xf32>
    %cst_50 = arith.constant -1.000000e+00 : f32
    %130 = vector.broadcast %cst_50 : f32 to vector<1x1024xf32>
    %131 = arith.select %16, %130, %129 : vector<1x1024xi1>, vector<1x1024xf32>
    %132 = arith.cmpf ogt, %131, %68 : vector<1x1024xf32>
    %133 = arith.select %132, %131, %68 : vector<1x1024xi1>, vector<1x1024xf32>
    %134 = vector.broadcast %89 : f32 to vector<1x1024xf32>
    %135 = arith.select %132, %134, %70 : vector<1x1024xi1>, vector<1x1024xf32>
    %136 = vector.broadcast %91 : f32 to vector<1x1024xf32>
    %137 = arith.select %132, %136, %72 : vector<1x1024xi1>, vector<1x1024xf32>
    %138 = vector.broadcast %93 : f32 to vector<1x1024xf32>
    %139 = arith.select %132, %138, %74 : vector<1x1024xi1>, vector<1x1024xf32>
    %140 = vector.broadcast %95 : f32 to vector<1x1024xf32>
    %141 = arith.select %132, %140, %76 : vector<1x1024xi1>, vector<1x1024xf32>
    %cst_51 = arith.constant -1.000000e+01 : f32
    %142 = vector.broadcast %cst_51 : f32 to vector<1x1024xf32>
    %143 = arith.select %9, %131, %142 : vector<1x1024xi1>, vector<1x1024xf32>
    %cst_52 = arith.constant dense<0xFF800000> : vector<1xf32>
    %144 = vector.multi_reduction <maximumf>, %143, %cst_52 [1] : vector<1x1024xf32> to vector<1xf32>
    %145 = vector.shape_cast %144 : vector<1xf32> to vector<1x1xf32>
    %cst_53 = arith.constant 0.000000e+00 : f32
    %146 = vector.broadcast %cst_53 : f32 to vector<1x1xf32>
    %147 = arith.cmpf oeq, %145, %146 : vector<1x1xf32>
    %cst_54 = arith.constant 9.99999974E-6 : f32
    %148 = vector.broadcast %cst_54 : f32 to vector<1x1xf32>
    %149 = arith.select %147, %148, %145 : vector<1x1xi1>, vector<1x1xf32>
    %150 = vector.broadcast %149 : vector<1x1xf32> to vector<1x1024xf32>
    %151 = arith.cmpf oeq, %143, %150 : vector<1x1024xf32>
    %152 = arith.ori %87, %151 : vector<1x1024xi1>
    %153 = arith.index_cast %arg0 : i32 to index
    %c10_55 = arith.constant 10 : index
    %154 = memref.load %arg1[%153, %c10_55] : memref<2x40xf32, #tpu.memory_space<smem>>
    %155 = arith.index_cast %arg0 : i32 to index
    %c11_56 = arith.constant 11 : index
    %156 = memref.load %arg1[%155, %c11_56] : memref<2x40xf32, #tpu.memory_space<smem>>
    %157 = arith.index_cast %arg0 : i32 to index
    %c12_57 = arith.constant 12 : index
    %158 = memref.load %arg1[%157, %c12_57] : memref<2x40xf32, #tpu.memory_space<smem>>
    %159 = arith.index_cast %arg0 : i32 to index
    %c13 = arith.constant 13 : index
    %160 = memref.load %arg1[%159, %c13] : memref<2x40xf32, #tpu.memory_space<smem>>
    %161 = arith.subf %158, %154 : f32
    %cst_58 = arith.constant 1.000000e+00 : f32
    %162 = arith.addf %161, %cst_58 : f32
    %163 = arith.subf %160, %156 : f32
    %cst_59 = arith.constant 1.000000e+00 : f32
    %164 = arith.addf %163, %cst_59 : f32
    %165 = arith.mulf %162, %164 : f32
    %cst_60 = arith.constant 1.000000e+00 : f32
    %166 = arith.cmpf oeq, %162, %cst_60 : f32
    %cst_61 = arith.constant 1.000000e+00 : f32
    %167 = arith.cmpf oeq, %164, %cst_61 : f32
    %168 = arith.andi %166, %167 : i1
    %169 = vector.broadcast %158 : f32 to vector<1x1024xf32>
    %170 = arith.minimumf %2, %169 : vector<1x1024xf32>
    %171 = vector.broadcast %154 : f32 to vector<1x1024xf32>
    %172 = arith.maximumf %0, %171 : vector<1x1024xf32>
    %173 = arith.subf %170, %172 : vector<1x1024xf32>
    %cst_62 = arith.constant 1.000000e+00 : f32
    %174 = vector.broadcast %cst_62 : f32 to vector<1x1024xf32>
    %175 = arith.addf %173, %174 : vector<1x1024xf32>
    %cst_63 = arith.constant 0.000000e+00 : f32
    %176 = vector.broadcast %cst_63 : f32 to vector<1x1024xf32>
    %177 = arith.maximumf %175, %176 : vector<1x1024xf32>
    %178 = vector.broadcast %160 : f32 to vector<1x1024xf32>
    %179 = arith.minimumf %3, %178 : vector<1x1024xf32>
    %180 = vector.broadcast %156 : f32 to vector<1x1024xf32>
    %181 = arith.maximumf %1, %180 : vector<1x1024xf32>
    %182 = arith.subf %179, %181 : vector<1x1024xf32>
    %cst_64 = arith.constant 1.000000e+00 : f32
    %183 = vector.broadcast %cst_64 : f32 to vector<1x1024xf32>
    %184 = arith.addf %182, %183 : vector<1x1024xf32>
    %cst_65 = arith.constant 0.000000e+00 : f32
    %185 = vector.broadcast %cst_65 : f32 to vector<1x1024xf32>
    %186 = arith.maximumf %184, %185 : vector<1x1024xf32>
    %187 = arith.mulf %177, %186 : vector<1x1024xf32>
    %188 = vector.broadcast %165 : f32 to vector<1x1024xf32>
    %189 = arith.subf %188, %187 : vector<1x1024xf32>
    %190 = arith.addf %4, %189 : vector<1x1024xf32>
    %191 = tpu.reciprocal %190 {approx = true} : vector<1x1024xf32> -> vector<1x1024xf32>
    %192 = arith.mulf %187, %191 : vector<1x1024xf32>
    %cst_66 = arith.constant 0.000000e+00 : f32
    %193 = vector.broadcast %cst_66 : f32 to vector<1x1024xf32>
    %194 = arith.select %168, %193, %192 : vector<1x1024xf32>
    %cst_67 = arith.constant -1.000000e+00 : f32
    %195 = vector.broadcast %cst_67 : f32 to vector<1x1024xf32>
    %196 = arith.select %16, %195, %194 : vector<1x1024xi1>, vector<1x1024xf32>
    %197 = arith.cmpf ogt, %196, %133 : vector<1x1024xf32>
    %198 = arith.select %197, %196, %133 : vector<1x1024xi1>, vector<1x1024xf32>
    %199 = vector.broadcast %154 : f32 to vector<1x1024xf32>
    %200 = arith.select %197, %199, %135 : vector<1x1024xi1>, vector<1x1024xf32>
    %201 = vector.broadcast %156 : f32 to vector<1x1024xf32>
    %202 = arith.select %197, %201, %137 : vector<1x1024xi1>, vector<1x1024xf32>
    %203 = vector.broadcast %158 : f32 to vector<1x1024xf32>
    %204 = arith.select %197, %203, %139 : vector<1x1024xi1>, vector<1x1024xf32>
    %205 = vector.broadcast %160 : f32 to vector<1x1024xf32>
    %206 = arith.select %197, %205, %141 : vector<1x1024xi1>, vector<1x1024xf32>
    %cst_68 = arith.constant -1.000000e+01 : f32
    %207 = vector.broadcast %cst_68 : f32 to vector<1x1024xf32>
    %208 = arith.select %9, %196, %207 : vector<1x1024xi1>, vector<1x1024xf32>
    %cst_69 = arith.constant dense<0xFF800000> : vector<1xf32>
    %209 = vector.multi_reduction <maximumf>, %208, %cst_69 [1] : vector<1x1024xf32> to vector<1xf32>
    %210 = vector.shape_cast %209 : vector<1xf32> to vector<1x1xf32>
    %cst_70 = arith.constant 0.000000e+00 : f32
    %211 = vector.broadcast %cst_70 : f32 to vector<1x1xf32>
    %212 = arith.cmpf oeq, %210, %211 : vector<1x1xf32>
    %cst_71 = arith.constant 9.99999974E-6 : f32
    %213 = vector.broadcast %cst_71 : f32 to vector<1x1xf32>
    %214 = arith.select %212, %213, %210 : vector<1x1xi1>, vector<1x1xf32>
    %215 = vector.broadcast %214 : vector<1x1xf32> to vector<1x1024xf32>
    %216 = arith.cmpf oeq, %208, %215 : vector<1x1024xf32>
    %217 = arith.ori %152, %216 : vector<1x1024xi1>
    %218 = arith.index_cast %arg0 : i32 to index
    %c15 = arith.constant 15 : index
    %219 = memref.load %arg1[%218, %c15] : memref<2x40xf32, #tpu.memory_space<smem>>
    %220 = arith.index_cast %arg0 : i32 to index
    %c16 = arith.constant 16 : index
    %221 = memref.load %arg1[%220, %c16] : memref<2x40xf32, #tpu.memory_space<smem>>
    %222 = arith.index_cast %arg0 : i32 to index
    %c17 = arith.constant 17 : index
    %223 = memref.load %arg1[%222, %c17] : memref<2x40xf32, #tpu.memory_space<smem>>
    %224 = arith.index_cast %arg0 : i32 to index
    %c18 = arith.constant 18 : index
    %225 = memref.load %arg1[%224, %c18] : memref<2x40xf32, #tpu.memory_space<smem>>
    %226 = arith.subf %223, %219 : f32
    %cst_72 = arith.constant 1.000000e+00 : f32
    %227 = arith.addf %226, %cst_72 : f32
    %228 = arith.subf %225, %221 : f32
    %cst_73 = arith.constant 1.000000e+00 : f32
    %229 = arith.addf %228, %cst_73 : f32
    %230 = arith.mulf %227, %229 : f32
    %cst_74 = arith.constant 1.000000e+00 : f32
    %231 = arith.cmpf oeq, %227, %cst_74 : f32
    %cst_75 = arith.constant 1.000000e+00 : f32
    %232 = arith.cmpf oeq, %229, %cst_75 : f32
    %233 = arith.andi %231, %232 : i1
    %234 = vector.broadcast %223 : f32 to vector<1x1024xf32>
    %235 = arith.minimumf %2, %234 : vector<1x1024xf32>
    %236 = vector.broadcast %219 : f32 to vector<1x1024xf32>
    %237 = arith.maximumf %0, %236 : vector<1x1024xf32>
    %238 = arith.subf %235, %237 : vector<1x1024xf32>
    %cst_76 = arith.constant 1.000000e+00 : f32
    %239 = vector.broadcast %cst_76 : f32 to vector<1x1024xf32>
    %240 = arith.addf %238, %239 : vector<1x1024xf32>
    %cst_77 = arith.constant 0.000000e+00 : f32
    %241 = vector.broadcast %cst_77 : f32 to vector<1x1024xf32>
    %242 = arith.maximumf %240, %241 : vector<1x1024xf32>
    %243 = vector.broadcast %225 : f32 to vector<1x1024xf32>
    %244 = arith.minimumf %3, %243 : vector<1x1024xf32>
    %245 = vector.broadcast %221 : f32 to vector<1x1024xf32>
    %246 = arith.maximumf %1, %245 : vector<1x1024xf32>
    %247 = arith.subf %244, %246 : vector<1x1024xf32>
    %cst_78 = arith.constant 1.000000e+00 : f32
    %248 = vector.broadcast %cst_78 : f32 to vector<1x1024xf32>
    %249 = arith.addf %247, %248 : vector<1x1024xf32>
    %cst_79 = arith.constant 0.000000e+00 : f32
    %250 = vector.broadcast %cst_79 : f32 to vector<1x1024xf32>
    %251 = arith.maximumf %249, %250 : vector<1x1024xf32>
    %252 = arith.mulf %242, %251 : vector<1x1024xf32>
    %253 = vector.broadcast %230 : f32 to vector<1x1024xf32>
    %254 = arith.subf %253, %252 : vector<1x1024xf32>
    %255 = arith.addf %4, %254 : vector<1x1024xf32>
    %256 = tpu.reciprocal %255 {approx = true} : vector<1x1024xf32> -> vector<1x1024xf32>
    %257 = arith.mulf %252, %256 : vector<1x1024xf32>
    %cst_80 = arith.constant 0.000000e+00 : f32
    %258 = vector.broadcast %cst_80 : f32 to vector<1x1024xf32>
    %259 = arith.select %233, %258, %257 : vector<1x1024xf32>
    %cst_81 = arith.constant -1.000000e+00 : f32
    %260 = vector.broadcast %cst_81 : f32 to vector<1x1024xf32>
    %261 = arith.select %16, %260, %259 : vector<1x1024xi1>, vector<1x1024xf32>
    %262 = arith.cmpf ogt, %261, %198 : vector<1x1024xf32>
    %263 = arith.select %262, %261, %198 : vector<1x1024xi1>, vector<1x1024xf32>
    %264 = vector.broadcast %219 : f32 to vector<1x1024xf32>
    %265 = arith.select %262, %264, %200 : vector<1x1024xi1>, vector<1x1024xf32>
    %266 = vector.broadcast %221 : f32 to vector<1x1024xf32>
    %267 = arith.select %262, %266, %202 : vector<1x1024xi1>, vector<1x1024xf32>
    %268 = vector.broadcast %223 : f32 to vector<1x1024xf32>
    %269 = arith.select %262, %268, %204 : vector<1x1024xi1>, vector<1x1024xf32>
    %270 = vector.broadcast %225 : f32 to vector<1x1024xf32>
    %271 = arith.select %262, %270, %206 : vector<1x1024xi1>, vector<1x1024xf32>
    %cst_82 = arith.constant -1.000000e+01 : f32
    %272 = vector.broadcast %cst_82 : f32 to vector<1x1024xf32>
    %273 = arith.select %9, %261, %272 : vector<1x1024xi1>, vector<1x1024xf32>
    %cst_83 = arith.constant dense<0xFF800000> : vector<1xf32>
    %274 = vector.multi_reduction <maximumf>, %273, %cst_83 [1] : vector<1x1024xf32> to vector<1xf32>
    %275 = vector.shape_cast %274 : vector<1xf32> to vector<1x1xf32>
    %cst_84 = arith.constant 0.000000e+00 : f32
    %276 = vector.broadcast %cst_84 : f32 to vector<1x1xf32>
    %277 = arith.cmpf oeq, %275, %276 : vector<1x1xf32>
    %cst_85 = arith.constant 9.99999974E-6 : f32
    %278 = vector.broadcast %cst_85 : f32 to vector<1x1xf32>
    %279 = arith.select %277, %278, %275 : vector<1x1xi1>, vector<1x1xf32>
    %280 = vector.broadcast %279 : vector<1x1xf32> to vector<1x1024xf32>
    %281 = arith.cmpf oeq, %273, %280 : vector<1x1024xf32>
    %282 = arith.ori %217, %281 : vector<1x1024xi1>
    %283 = arith.index_cast %arg0 : i32 to index
    %c20 = arith.constant 20 : index
    %284 = memref.load %arg1[%283, %c20] : memref<2x40xf32, #tpu.memory_space<smem>>
    %285 = arith.index_cast %arg0 : i32 to index
    %c21 = arith.constant 21 : index
    %286 = memref.load %arg1[%285, %c21] : memref<2x40xf32, #tpu.memory_space<smem>>
    %287 = arith.index_cast %arg0 : i32 to index
    %c22 = arith.constant 22 : index
    %288 = memref.load %arg1[%287, %c22] : memref<2x40xf32, #tpu.memory_space<smem>>
    %289 = arith.index_cast %arg0 : i32 to index
    %c23 = arith.constant 23 : index
    %290 = memref.load %arg1[%289, %c23] : memref<2x40xf32, #tpu.memory_space<smem>>
    %291 = arith.subf %288, %284 : f32
    %cst_86 = arith.constant 1.000000e+00 : f32
    %292 = arith.addf %291, %cst_86 : f32
    %293 = arith.subf %290, %286 : f32
    %cst_87 = arith.constant 1.000000e+00 : f32
    %294 = arith.addf %293, %cst_87 : f32
    %295 = arith.mulf %292, %294 : f32
    %cst_88 = arith.constant 1.000000e+00 : f32
    %296 = arith.cmpf oeq, %292, %cst_88 : f32
    %cst_89 = arith.constant 1.000000e+00 : f32
    %297 = arith.cmpf oeq, %294, %cst_89 : f32
    %298 = arith.andi %296, %297 : i1
    %299 = vector.broadcast %288 : f32 to vector<1x1024xf32>
    %300 = arith.minimumf %2, %299 : vector<1x1024xf32>
    %301 = vector.broadcast %284 : f32 to vector<1x1024xf32>
    %302 = arith.maximumf %0, %301 : vector<1x1024xf32>
    %303 = arith.subf %300, %302 : vector<1x1024xf32>
    %cst_90 = arith.constant 1.000000e+00 : f32
    %304 = vector.broadcast %cst_90 : f32 to vector<1x1024xf32>
    %305 = arith.addf %303, %304 : vector<1x1024xf32>
    %cst_91 = arith.constant 0.000000e+00 : f32
    %306 = vector.broadcast %cst_91 : f32 to vector<1x1024xf32>
    %307 = arith.maximumf %305, %306 : vector<1x1024xf32>
    %308 = vector.broadcast %290 : f32 to vector<1x1024xf32>
    %309 = arith.minimumf %3, %308 : vector<1x1024xf32>
    %310 = vector.broadcast %286 : f32 to vector<1x1024xf32>
    %311 = arith.maximumf %1, %310 : vector<1x1024xf32>
    %312 = arith.subf %309, %311 : vector<1x1024xf32>
    %cst_92 = arith.constant 1.000000e+00 : f32
    %313 = vector.broadcast %cst_92 : f32 to vector<1x1024xf32>
    %314 = arith.addf %312, %313 : vector<1x1024xf32>
    %cst_93 = arith.constant 0.000000e+00 : f32
    %315 = vector.broadcast %cst_93 : f32 to vector<1x1024xf32>
    %316 = arith.maximumf %314, %315 : vector<1x1024xf32>
    %317 = arith.mulf %307, %316 : vector<1x1024xf32>
    %318 = vector.broadcast %295 : f32 to vector<1x1024xf32>
    %319 = arith.subf %318, %317 : vector<1x1024xf32>
    %320 = arith.addf %4, %319 : vector<1x1024xf32>
    %321 = tpu.reciprocal %320 {approx = true} : vector<1x1024xf32> -> vector<1x1024xf32>
    %322 = arith.mulf %317, %321 : vector<1x1024xf32>
    %cst_94 = arith.constant 0.000000e+00 : f32
    %323 = vector.broadcast %cst_94 : f32 to vector<1x1024xf32>
    %324 = arith.select %298, %323, %322 : vector<1x1024xf32>
    %cst_95 = arith.constant -1.000000e+00 : f32
    %325 = vector.broadcast %cst_95 : f32 to vector<1x1024xf32>
    %326 = arith.select %16, %325, %324 : vector<1x1024xi1>, vector<1x1024xf32>
    %327 = arith.cmpf ogt, %326, %263 : vector<1x1024xf32>
    %328 = arith.select %327, %326, %263 : vector<1x1024xi1>, vector<1x1024xf32>
    %329 = vector.broadcast %284 : f32 to vector<1x1024xf32>
    %330 = arith.select %327, %329, %265 : vector<1x1024xi1>, vector<1x1024xf32>
    %331 = vector.broadcast %286 : f32 to vector<1x1024xf32>
    %332 = arith.select %327, %331, %267 : vector<1x1024xi1>, vector<1x1024xf32>
    %333 = vector.broadcast %288 : f32 to vector<1x1024xf32>
    %334 = arith.select %327, %333, %269 : vector<1x1024xi1>, vector<1x1024xf32>
    %335 = vector.broadcast %290 : f32 to vector<1x1024xf32>
    %336 = arith.select %327, %335, %271 : vector<1x1024xi1>, vector<1x1024xf32>
    %cst_96 = arith.constant -1.000000e+01 : f32
    %337 = vector.broadcast %cst_96 : f32 to vector<1x1024xf32>
    %338 = arith.select %9, %326, %337 : vector<1x1024xi1>, vector<1x1024xf32>
    %cst_97 = arith.constant dense<0xFF800000> : vector<1xf32>
    %339 = vector.multi_reduction <maximumf>, %338, %cst_97 [1] : vector<1x1024xf32> to vector<1xf32>
    %340 = vector.shape_cast %339 : vector<1xf32> to vector<1x1xf32>
    %cst_98 = arith.constant 0.000000e+00 : f32
    %341 = vector.broadcast %cst_98 : f32 to vector<1x1xf32>
    %342 = arith.cmpf oeq, %340, %341 : vector<1x1xf32>
    %cst_99 = arith.constant 9.99999974E-6 : f32
    %343 = vector.broadcast %cst_99 : f32 to vector<1x1xf32>
    %344 = arith.select %342, %343, %340 : vector<1x1xi1>, vector<1x1xf32>
    %345 = vector.broadcast %344 : vector<1x1xf32> to vector<1x1024xf32>
    %346 = arith.cmpf oeq, %338, %345 : vector<1x1024xf32>
    %347 = arith.ori %282, %346 : vector<1x1024xi1>
    %348 = arith.index_cast %arg0 : i32 to index
    %c25 = arith.constant 25 : index
    %349 = memref.load %arg1[%348, %c25] : memref<2x40xf32, #tpu.memory_space<smem>>
    %350 = arith.index_cast %arg0 : i32 to index
    %c26 = arith.constant 26 : index
    %351 = memref.load %arg1[%350, %c26] : memref<2x40xf32, #tpu.memory_space<smem>>
    %352 = arith.index_cast %arg0 : i32 to index
    %c27 = arith.constant 27 : index
    %353 = memref.load %arg1[%352, %c27] : memref<2x40xf32, #tpu.memory_space<smem>>
    %354 = arith.index_cast %arg0 : i32 to index
    %c28 = arith.constant 28 : index
    %355 = memref.load %arg1[%354, %c28] : memref<2x40xf32, #tpu.memory_space<smem>>
    %356 = arith.subf %353, %349 : f32
    %cst_100 = arith.constant 1.000000e+00 : f32
    %357 = arith.addf %356, %cst_100 : f32
    %358 = arith.subf %355, %351 : f32
    %cst_101 = arith.constant 1.000000e+00 : f32
    %359 = arith.addf %358, %cst_101 : f32
    %360 = arith.mulf %357, %359 : f32
    %cst_102 = arith.constant 1.000000e+00 : f32
    %361 = arith.cmpf oeq, %357, %cst_102 : f32
    %cst_103 = arith.constant 1.000000e+00 : f32
    %362 = arith.cmpf oeq, %359, %cst_103 : f32
    %363 = arith.andi %361, %362 : i1
    %364 = vector.broadcast %353 : f32 to vector<1x1024xf32>
    %365 = arith.minimumf %2, %364 : vector<1x1024xf32>
    %366 = vector.broadcast %349 : f32 to vector<1x1024xf32>
    %367 = arith.maximumf %0, %366 : vector<1x1024xf32>
    %368 = arith.subf %365, %367 : vector<1x1024xf32>
    %cst_104 = arith.constant 1.000000e+00 : f32
    %369 = vector.broadcast %cst_104 : f32 to vector<1x1024xf32>
    %370 = arith.addf %368, %369 : vector<1x1024xf32>
    %cst_105 = arith.constant 0.000000e+00 : f32
    %371 = vector.broadcast %cst_105 : f32 to vector<1x1024xf32>
    %372 = arith.maximumf %370, %371 : vector<1x1024xf32>
    %373 = vector.broadcast %355 : f32 to vector<1x1024xf32>
    %374 = arith.minimumf %3, %373 : vector<1x1024xf32>
    %375 = vector.broadcast %351 : f32 to vector<1x1024xf32>
    %376 = arith.maximumf %1, %375 : vector<1x1024xf32>
    %377 = arith.subf %374, %376 : vector<1x1024xf32>
    %cst_106 = arith.constant 1.000000e+00 : f32
    %378 = vector.broadcast %cst_106 : f32 to vector<1x1024xf32>
    %379 = arith.addf %377, %378 : vector<1x1024xf32>
    %cst_107 = arith.constant 0.000000e+00 : f32
    %380 = vector.broadcast %cst_107 : f32 to vector<1x1024xf32>
    %381 = arith.maximumf %379, %380 : vector<1x1024xf32>
    %382 = arith.mulf %372, %381 : vector<1x1024xf32>
    %383 = vector.broadcast %360 : f32 to vector<1x1024xf32>
    %384 = arith.subf %383, %382 : vector<1x1024xf32>
    %385 = arith.addf %4, %384 : vector<1x1024xf32>
    %386 = tpu.reciprocal %385 {approx = true} : vector<1x1024xf32> -> vector<1x1024xf32>
    %387 = arith.mulf %382, %386 : vector<1x1024xf32>
    %cst_108 = arith.constant 0.000000e+00 : f32
    %388 = vector.broadcast %cst_108 : f32 to vector<1x1024xf32>
    %389 = arith.select %363, %388, %387 : vector<1x1024xf32>
    %cst_109 = arith.constant -1.000000e+00 : f32
    %390 = vector.broadcast %cst_109 : f32 to vector<1x1024xf32>
    %391 = arith.select %16, %390, %389 : vector<1x1024xi1>, vector<1x1024xf32>
    %392 = arith.cmpf ogt, %391, %328 : vector<1x1024xf32>
    %393 = arith.select %392, %391, %328 : vector<1x1024xi1>, vector<1x1024xf32>
    %394 = vector.broadcast %349 : f32 to vector<1x1024xf32>
    %395 = arith.select %392, %394, %330 : vector<1x1024xi1>, vector<1x1024xf32>
    %396 = vector.broadcast %351 : f32 to vector<1x1024xf32>
    %397 = arith.select %392, %396, %332 : vector<1x1024xi1>, vector<1x1024xf32>
    %398 = vector.broadcast %353 : f32 to vector<1x1024xf32>
    %399 = arith.select %392, %398, %334 : vector<1x1024xi1>, vector<1x1024xf32>
    %400 = vector.broadcast %355 : f32 to vector<1x1024xf32>
    %401 = arith.select %392, %400, %336 : vector<1x1024xi1>, vector<1x1024xf32>
    %cst_110 = arith.constant -1.000000e+01 : f32
    %402 = vector.broadcast %cst_110 : f32 to vector<1x1024xf32>
    %403 = arith.select %9, %391, %402 : vector<1x1024xi1>, vector<1x1024xf32>
    %cst_111 = arith.constant dense<0xFF800000> : vector<1xf32>
    %404 = vector.multi_reduction <maximumf>, %403, %cst_111 [1] : vector<1x1024xf32> to vector<1xf32>
    %405 = vector.shape_cast %404 : vector<1xf32> to vector<1x1xf32>
    %cst_112 = arith.constant 0.000000e+00 : f32
    %406 = vector.broadcast %cst_112 : f32 to vector<1x1xf32>
    %407 = arith.cmpf oeq, %405, %406 : vector<1x1xf32>
    %cst_113 = arith.constant 9.99999974E-6 : f32
    %408 = vector.broadcast %cst_113 : f32 to vector<1x1xf32>
    %409 = arith.select %407, %408, %405 : vector<1x1xi1>, vector<1x1xf32>
    %410 = vector.broadcast %409 : vector<1x1xf32> to vector<1x1024xf32>
    %411 = arith.cmpf oeq, %403, %410 : vector<1x1024xf32>
    %412 = arith.ori %347, %411 : vector<1x1024xi1>
    %413 = arith.index_cast %arg0 : i32 to index
    %c30 = arith.constant 30 : index
    %414 = memref.load %arg1[%413, %c30] : memref<2x40xf32, #tpu.memory_space<smem>>
    %415 = arith.index_cast %arg0 : i32 to index
    %c31 = arith.constant 31 : index
    %416 = memref.load %arg1[%415, %c31] : memref<2x40xf32, #tpu.memory_space<smem>>
    %417 = arith.index_cast %arg0 : i32 to index
    %c32 = arith.constant 32 : index
    %418 = memref.load %arg1[%417, %c32] : memref<2x40xf32, #tpu.memory_space<smem>>
    %419 = arith.index_cast %arg0 : i32 to index
    %c33 = arith.constant 33 : index
    %420 = memref.load %arg1[%419, %c33] : memref<2x40xf32, #tpu.memory_space<smem>>
    %421 = arith.subf %418, %414 : f32
    %cst_114 = arith.constant 1.000000e+00 : f32
    %422 = arith.addf %421, %cst_114 : f32
    %423 = arith.subf %420, %416 : f32
    %cst_115 = arith.constant 1.000000e+00 : f32
    %424 = arith.addf %423, %cst_115 : f32
    %425 = arith.mulf %422, %424 : f32
    %cst_116 = arith.constant 1.000000e+00 : f32
    %426 = arith.cmpf oeq, %422, %cst_116 : f32
    %cst_117 = arith.constant 1.000000e+00 : f32
    %427 = arith.cmpf oeq, %424, %cst_117 : f32
    %428 = arith.andi %426, %427 : i1
    %429 = vector.broadcast %418 : f32 to vector<1x1024xf32>
    %430 = arith.minimumf %2, %429 : vector<1x1024xf32>
    %431 = vector.broadcast %414 : f32 to vector<1x1024xf32>
    %432 = arith.maximumf %0, %431 : vector<1x1024xf32>
    %433 = arith.subf %430, %432 : vector<1x1024xf32>
    %cst_118 = arith.constant 1.000000e+00 : f32
    %434 = vector.broadcast %cst_118 : f32 to vector<1x1024xf32>
    %435 = arith.addf %433, %434 : vector<1x1024xf32>
    %cst_119 = arith.constant 0.000000e+00 : f32
    %436 = vector.broadcast %cst_119 : f32 to vector<1x1024xf32>
    %437 = arith.maximumf %435, %436 : vector<1x1024xf32>
    %438 = vector.broadcast %420 : f32 to vector<1x1024xf32>
    %439 = arith.minimumf %3, %438 : vector<1x1024xf32>
    %440 = vector.broadcast %416 : f32 to vector<1x1024xf32>
    %441 = arith.maximumf %1, %440 : vector<1x1024xf32>
    %442 = arith.subf %439, %441 : vector<1x1024xf32>
    %cst_120 = arith.constant 1.000000e+00 : f32
    %443 = vector.broadcast %cst_120 : f32 to vector<1x1024xf32>
    %444 = arith.addf %442, %443 : vector<1x1024xf32>
    %cst_121 = arith.constant 0.000000e+00 : f32
    %445 = vector.broadcast %cst_121 : f32 to vector<1x1024xf32>
    %446 = arith.maximumf %444, %445 : vector<1x1024xf32>
    %447 = arith.mulf %437, %446 : vector<1x1024xf32>
    %448 = vector.broadcast %425 : f32 to vector<1x1024xf32>
    %449 = arith.subf %448, %447 : vector<1x1024xf32>
    %450 = arith.addf %4, %449 : vector<1x1024xf32>
    %451 = tpu.reciprocal %450 {approx = true} : vector<1x1024xf32> -> vector<1x1024xf32>
    %452 = arith.mulf %447, %451 : vector<1x1024xf32>
    %cst_122 = arith.constant 0.000000e+00 : f32
    %453 = vector.broadcast %cst_122 : f32 to vector<1x1024xf32>
    %454 = arith.select %428, %453, %452 : vector<1x1024xf32>
    %cst_123 = arith.constant -1.000000e+00 : f32
    %455 = vector.broadcast %cst_123 : f32 to vector<1x1024xf32>
    %456 = arith.select %16, %455, %454 : vector<1x1024xi1>, vector<1x1024xf32>
    %457 = arith.cmpf ogt, %456, %393 : vector<1x1024xf32>
    %458 = arith.select %457, %456, %393 : vector<1x1024xi1>, vector<1x1024xf32>
    %459 = vector.broadcast %414 : f32 to vector<1x1024xf32>
    %460 = arith.select %457, %459, %395 : vector<1x1024xi1>, vector<1x1024xf32>
    %461 = vector.broadcast %416 : f32 to vector<1x1024xf32>
    %462 = arith.select %457, %461, %397 : vector<1x1024xi1>, vector<1x1024xf32>
    %463 = vector.broadcast %418 : f32 to vector<1x1024xf32>
    %464 = arith.select %457, %463, %399 : vector<1x1024xi1>, vector<1x1024xf32>
    %465 = vector.broadcast %420 : f32 to vector<1x1024xf32>
    %466 = arith.select %457, %465, %401 : vector<1x1024xi1>, vector<1x1024xf32>
    %cst_124 = arith.constant -1.000000e+01 : f32
    %467 = vector.broadcast %cst_124 : f32 to vector<1x1024xf32>
    %468 = arith.select %9, %456, %467 : vector<1x1024xi1>, vector<1x1024xf32>
    %cst_125 = arith.constant dense<0xFF800000> : vector<1xf32>
    %469 = vector.multi_reduction <maximumf>, %468, %cst_125 [1] : vector<1x1024xf32> to vector<1xf32>
    %470 = vector.shape_cast %469 : vector<1xf32> to vector<1x1xf32>
    %cst_126 = arith.constant 0.000000e+00 : f32
    %471 = vector.broadcast %cst_126 : f32 to vector<1x1xf32>
    %472 = arith.cmpf oeq, %470, %471 : vector<1x1xf32>
    %cst_127 = arith.constant 9.99999974E-6 : f32
    %473 = vector.broadcast %cst_127 : f32 to vector<1x1xf32>
    %474 = arith.select %472, %473, %470 : vector<1x1xi1>, vector<1x1xf32>
    %475 = vector.broadcast %474 : vector<1x1xf32> to vector<1x1024xf32>
    %476 = arith.cmpf oeq, %468, %475 : vector<1x1024xf32>
    %477 = arith.ori %412, %476 : vector<1x1024xi1>
    %478 = arith.index_cast %arg0 : i32 to index
    %c35 = arith.constant 35 : index
    %479 = memref.load %arg1[%478, %c35] : memref<2x40xf32, #tpu.memory_space<smem>>
    %480 = arith.index_cast %arg0 : i32 to index
    %c36 = arith.constant 36 : index
    %481 = memref.load %arg1[%480, %c36] : memref<2x40xf32, #tpu.memory_space<smem>>
    %482 = arith.index_cast %arg0 : i32 to index
    %c37 = arith.constant 37 : index
    %483 = memref.load %arg1[%482, %c37] : memref<2x40xf32, #tpu.memory_space<smem>>
    %484 = arith.index_cast %arg0 : i32 to index
    %c38 = arith.constant 38 : index
    %485 = memref.load %arg1[%484, %c38] : memref<2x40xf32, #tpu.memory_space<smem>>
    %486 = arith.subf %483, %479 : f32
    %cst_128 = arith.constant 1.000000e+00 : f32
    %487 = arith.addf %486, %cst_128 : f32
    %488 = arith.subf %485, %481 : f32
    %cst_129 = arith.constant 1.000000e+00 : f32
    %489 = arith.addf %488, %cst_129 : f32
    %490 = arith.mulf %487, %489 : f32
    %cst_130 = arith.constant 1.000000e+00 : f32
    %491 = arith.cmpf oeq, %487, %cst_130 : f32
    %cst_131 = arith.constant 1.000000e+00 : f32
    %492 = arith.cmpf oeq, %489, %cst_131 : f32
    %493 = arith.andi %491, %492 : i1
    %494 = vector.broadcast %483 : f32 to vector<1x1024xf32>
    %495 = arith.minimumf %2, %494 : vector<1x1024xf32>
    %496 = vector.broadcast %479 : f32 to vector<1x1024xf32>
    %497 = arith.maximumf %0, %496 : vector<1x1024xf32>
    %498 = arith.subf %495, %497 : vector<1x1024xf32>
    %cst_132 = arith.constant 1.000000e+00 : f32
    %499 = vector.broadcast %cst_132 : f32 to vector<1x1024xf32>
    %500 = arith.addf %498, %499 : vector<1x1024xf32>
    %cst_133 = arith.constant 0.000000e+00 : f32
    %501 = vector.broadcast %cst_133 : f32 to vector<1x1024xf32>
    %502 = arith.maximumf %500, %501 : vector<1x1024xf32>
    %503 = vector.broadcast %485 : f32 to vector<1x1024xf32>
    %504 = arith.minimumf %3, %503 : vector<1x1024xf32>
    %505 = vector.broadcast %481 : f32 to vector<1x1024xf32>
    %506 = arith.maximumf %1, %505 : vector<1x1024xf32>
    %507 = arith.subf %504, %506 : vector<1x1024xf32>
    %cst_134 = arith.constant 1.000000e+00 : f32
    %508 = vector.broadcast %cst_134 : f32 to vector<1x1024xf32>
    %509 = arith.addf %507, %508 : vector<1x1024xf32>
    %cst_135 = arith.constant 0.000000e+00 : f32
    %510 = vector.broadcast %cst_135 : f32 to vector<1x1024xf32>
    %511 = arith.maximumf %509, %510 : vector<1x1024xf32>
    %512 = arith.mulf %502, %511 : vector<1x1024xf32>
    %513 = vector.broadcast %490 : f32 to vector<1x1024xf32>
    %514 = arith.subf %513, %512 : vector<1x1024xf32>
    %515 = arith.addf %4, %514 : vector<1x1024xf32>
    %516 = tpu.reciprocal %515 {approx = true} : vector<1x1024xf32> -> vector<1x1024xf32>
    %517 = arith.mulf %512, %516 : vector<1x1024xf32>
    %cst_136 = arith.constant 0.000000e+00 : f32
    %518 = vector.broadcast %cst_136 : f32 to vector<1x1024xf32>
    %519 = arith.select %493, %518, %517 : vector<1x1024xf32>
    %cst_137 = arith.constant -1.000000e+00 : f32
    %520 = vector.broadcast %cst_137 : f32 to vector<1x1024xf32>
    %521 = arith.select %16, %520, %519 : vector<1x1024xi1>, vector<1x1024xf32>
    %522 = arith.cmpf ogt, %521, %458 : vector<1x1024xf32>
    %523 = arith.select %522, %521, %458 : vector<1x1024xi1>, vector<1x1024xf32>
    %524 = vector.broadcast %479 : f32 to vector<1x1024xf32>
    %525 = arith.select %522, %524, %460 : vector<1x1024xi1>, vector<1x1024xf32>
    %526 = vector.broadcast %481 : f32 to vector<1x1024xf32>
    %527 = arith.select %522, %526, %462 : vector<1x1024xi1>, vector<1x1024xf32>
    %528 = vector.broadcast %483 : f32 to vector<1x1024xf32>
    %529 = arith.select %522, %528, %464 : vector<1x1024xi1>, vector<1x1024xf32>
    %530 = vector.broadcast %485 : f32 to vector<1x1024xf32>
    %531 = arith.select %522, %530, %466 : vector<1x1024xi1>, vector<1x1024xf32>
    %cst_138 = arith.constant -1.000000e+01 : f32
    %532 = vector.broadcast %cst_138 : f32 to vector<1x1024xf32>
    %533 = arith.select %9, %521, %532 : vector<1x1024xi1>, vector<1x1024xf32>
    %cst_139 = arith.constant dense<0xFF800000> : vector<1xf32>
    %534 = vector.multi_reduction <maximumf>, %533, %cst_139 [1] : vector<1x1024xf32> to vector<1xf32>
    %535 = vector.shape_cast %534 : vector<1xf32> to vector<1x1xf32>
    %cst_140 = arith.constant 0.000000e+00 : f32
    %536 = vector.broadcast %cst_140 : f32 to vector<1x1xf32>
    %537 = arith.cmpf oeq, %535, %536 : vector<1x1xf32>
    %cst_141 = arith.constant 9.99999974E-6 : f32
    %538 = vector.broadcast %cst_141 : f32 to vector<1x1xf32>
    %539 = arith.select %537, %538, %535 : vector<1x1xi1>, vector<1x1xf32>
    %540 = vector.broadcast %539 : vector<1x1xf32> to vector<1x1024xf32>
    %541 = arith.cmpf oeq, %533, %540 : vector<1x1024xf32>
    %542 = arith.ori %477, %541 : vector<1x1024xi1>
    %cst_142 = arith.constant -1.000000e+00 : f32
    %543 = vector.broadcast %cst_142 : f32 to vector<1x1024xf32>
    %cst_143 = arith.constant 3.000000e-01 : f32
    %544 = vector.broadcast %cst_143 : f32 to vector<1x1024xf32>
    %545 = arith.cmpf olt, %523, %544 : vector<1x1024xf32>
    %cst_144 = arith.constant 0.000000e+00 : f32
    %546 = vector.broadcast %cst_144 : f32 to vector<1x1024xf32>
    %547 = arith.select %545, %546, %543 : vector<1x1024xi1>, vector<1x1024xf32>
    %cst_145 = arith.constant 1.000000e+00 : f32
    %548 = vector.broadcast %cst_145 : f32 to vector<1x1024xf32>
    %549 = arith.select %542, %548, %547 : vector<1x1024xi1>, vector<1x1024xf32>
    %cst_146 = arith.constant 0.699999988 : f32
    %550 = vector.broadcast %cst_146 : f32 to vector<1x1024xf32>
    %551 = arith.cmpf oge, %523, %550 : vector<1x1024xf32>
    %cst_147 = arith.constant 1.000000e+00 : f32
    %552 = vector.broadcast %cst_147 : f32 to vector<1x1024xf32>
    %553 = arith.select %551, %552, %549 : vector<1x1024xi1>, vector<1x1024xf32>
    %cst_148 = arith.constant -1.000000e+00 : f32
    %554 = vector.broadcast %cst_148 : f32 to vector<1x1024xf32>
    %555 = arith.select %9, %553, %554 : vector<1x1024xi1>, vector<1x1024xf32>
    %556 = arith.subf %529, %525 : vector<1x1024xf32>
    %cst_149 = arith.constant 1.000000e+00 : f32
    %557 = vector.broadcast %cst_149 : f32 to vector<1x1024xf32>
    %558 = arith.addf %556, %557 : vector<1x1024xf32>
    %559 = arith.subf %531, %527 : vector<1x1024xf32>
    %cst_150 = arith.constant 1.000000e+00 : f32
    %560 = vector.broadcast %cst_150 : f32 to vector<1x1024xf32>
    %561 = arith.addf %559, %560 : vector<1x1024xf32>
    %cst_151 = arith.constant 5.000000e-01 : f32
    %562 = vector.broadcast %cst_151 : f32 to vector<1x1024xf32>
    %563 = arith.mulf %562, %558 : vector<1x1024xf32>
    %564 = arith.addf %525, %563 : vector<1x1024xf32>
    %cst_152 = arith.constant 5.000000e-01 : f32
    %565 = vector.broadcast %cst_152 : f32 to vector<1x1024xf32>
    %566 = arith.mulf %565, %561 : vector<1x1024xf32>
    %567 = arith.addf %527, %566 : vector<1x1024xf32>
    %568 = arith.subf %564, %5 : vector<1x1024xf32>
    %569 = arith.mulf %568, %10 : vector<1x1024xf32>
    %570 = arith.subf %567, %6 : vector<1x1024xf32>
    %571 = arith.mulf %570, %11 : vector<1x1024xf32>
    %572 = math.log %558 : vector<1x1024xf32>
    %573 = arith.subf %572, %12 : vector<1x1024xf32>
    %574 = math.log %561 : vector<1x1024xf32>
    %575 = arith.subf %574, %13 : vector<1x1024xf32>
    %c0_153 = arith.constant 0 : index
    %c0_154 = arith.constant 0 : index
    %c0_155 = arith.constant 0 : index
    %576 = vector.load %arg3[%c0_153, %c0_154, %c0_155] : memref<1x8x1024xf32, #tpu.memory_space<vmem>>, vector<1x1x1024xf32>
    %577 = vector.shape_cast %576 : vector<1x1x1024xf32> to vector<1x1024xf32>
    %578 = vector.shape_cast %555 : vector<1x1024xf32> to vector<1x1x1024xf32>
    tpu.vector_store %arg3[%c0_153, %c0_154, %c0_155], %578 {strides = array<i32>} : memref<1x8x1024xf32, #tpu.memory_space<vmem>>, vector<1x1x1024xf32>,
    %cst_156 = arith.constant 0.000000e+00 : f32
    %579 = vector.broadcast %cst_156 : f32 to vector<1x1024xf32>
    %580 = arith.select %9, %569, %579 : vector<1x1024xi1>, vector<1x1024xf32>
    %c0_157 = arith.constant 0 : index
    %c1_158 = arith.constant 1 : index
    %c0_159 = arith.constant 0 : index
    %581 = vector.load %arg3[%c0_157, %c1_158, %c0_159] : memref<1x8x1024xf32, #tpu.memory_space<vmem>>, vector<1x1x1024xf32>
    %582 = vector.shape_cast %581 : vector<1x1x1024xf32> to vector<1x1024xf32>
    %583 = vector.shape_cast %580 : vector<1x1024xf32> to vector<1x1x1024xf32>
    tpu.vector_store %arg3[%c0_157, %c1_158, %c0_159], %583 {strides = array<i32>} : memref<1x8x1024xf32, #tpu.memory_space<vmem>>, vector<1x1x1024xf32>,
    %cst_160 = arith.constant 0.000000e+00 : f32
    %584 = vector.broadcast %cst_160 : f32 to vector<1x1024xf32>
    %585 = arith.select %9, %571, %584 : vector<1x1024xi1>, vector<1x1024xf32>
    %c0_161 = arith.constant 0 : index
    %c2_162 = arith.constant 2 : index
    %c0_163 = arith.constant 0 : index
    %586 = vector.load %arg3[%c0_161, %c2_162, %c0_163] : memref<1x8x1024xf32, #tpu.memory_space<vmem>>, vector<1x1x1024xf32>
    %587 = vector.shape_cast %586 : vector<1x1x1024xf32> to vector<1x1024xf32>
    %588 = vector.shape_cast %585 : vector<1x1024xf32> to vector<1x1x1024xf32>
    tpu.vector_store %arg3[%c0_161, %c2_162, %c0_163], %588 {strides = array<i32>} : memref<1x8x1024xf32, #tpu.memory_space<vmem>>, vector<1x1x1024xf32>,
    %cst_164 = arith.constant 0.000000e+00 : f32
    %589 = vector.broadcast %cst_164 : f32 to vector<1x1024xf32>
    %590 = arith.select %9, %573, %589 : vector<1x1024xi1>, vector<1x1024xf32>
    %c0_165 = arith.constant 0 : index
    %c3_166 = arith.constant 3 : index
    %c0_167 = arith.constant 0 : index
    %591 = vector.load %arg3[%c0_165, %c3_166, %c0_167] : memref<1x8x1024xf32, #tpu.memory_space<vmem>>, vector<1x1x1024xf32>
    %592 = vector.shape_cast %591 : vector<1x1x1024xf32> to vector<1x1024xf32>
    %593 = vector.shape_cast %590 : vector<1x1024xf32> to vector<1x1x1024xf32>
    tpu.vector_store %arg3[%c0_165, %c3_166, %c0_167], %593 {strides = array<i32>} : memref<1x8x1024xf32, #tpu.memory_space<vmem>>, vector<1x1x1024xf32>,
    %cst_168 = arith.constant 0.000000e+00 : f32
    %594 = vector.broadcast %cst_168 : f32 to vector<1x1024xf32>
    %595 = arith.select %9, %575, %594 : vector<1x1024xi1>, vector<1x1024xf32>
    %c0_169 = arith.constant 0 : index
    %c4_170 = arith.constant 4 : index
    %c0_171 = arith.constant 0 : index
    %596 = vector.load %arg3[%c0_169, %c4_170, %c0_171] : memref<1x8x1024xf32, #tpu.memory_space<vmem>>, vector<1x1x1024xf32>
    %597 = vector.shape_cast %596 : vector<1x1x1024xf32> to vector<1x1024xf32>
    %598 = vector.shape_cast %595 : vector<1x1024xf32> to vector<1x1x1024xf32>
    tpu.vector_store %arg3[%c0_169, %c4_170, %c0_171], %598 {strides = array<i32>} : memref<1x8x1024xf32, #tpu.memory_space<vmem>>, vector<1x1x1024xf32>,
    %cst_172 = arith.constant 0.000000e+00 : f32
    %599 = vector.broadcast %cst_172 : f32 to vector<3x1024xf32>
    %c0_173 = arith.constant 0 : index
    %c5_174 = arith.constant 5 : index
    %c0_175 = arith.constant 0 : index
    %600 = vector.load %arg3[%c0_173, %c5_174, %c0_175] : memref<1x8x1024xf32, #tpu.memory_space<vmem>>, vector<1x3x1024xf32>
    %601 = vector.shape_cast %600 : vector<1x3x1024xf32> to vector<3x1024xf32>
    %602 = vector.shape_cast %599 : vector<3x1024xf32> to vector<1x3x1024xf32>
    tpu.vector_store %arg3[%c0_173, %c5_174, %c0_175], %602 {strides = array<i32>} : memref<1x8x1024xf32, #tpu.memory_space<vmem>>, vector<1x3x1024xf32>,
    return
  }
  func.func @transform_0(%arg0: i32) -> (i32, i32) {
    %c0_i32 = arith.constant 0 : i32
    %c0_i32_0 = arith.constant 0 : i32
    %c0_i32_1 = arith.constant 0 : i32
    return %c0_i32, %c0_i32_0 : i32, i32
  }
  func.func @transform_1(%arg0: i32) -> (i32, i32) {
    %c0_i32 = arith.constant 0 : i32
    %c0_i32_0 = arith.constant 0 : i32
    %c0_i32_1 = arith.constant 0 : i32
    return %c0_i32, %c0_i32_0 : i32, i32
  }
  func.func @transform_2(%arg0: i32) -> (i32, i32, i32) {
    %c0_i32 = arith.constant 0 : i32
    %c0_i32_0 = arith.constant 0 : i32
    %c0_i32_1 = arith.constant 0 : i32
    return %arg0, %c0_i32, %c0_i32_0 : i32, i32, i32
  }
}

</mosaic_0001>

<bundles_post_ra>
// kernel: tpu_custom_call.1
= control target key start
LH: loop header
LB: loop body
LE: loop exit
PB: predicated region body
PF: predicated region fallthrough
CT: control target
= control target key end

     0   :  { %s2606_s0 = inlined_call_operand.hbm [shape: f32[2,40], index: 0, kind: input, shape index: {}]   ;;  %s2607_s1 = inlined_call_operand.hbm [shape: f32[16,1024], index: 1, kind: input, shape index: {}]   ;;  %s2608_s2 = inlined_call_operand.hbm [shape: f32[2,8,1024], index: 2, kind: output, shape index: {}]  }
   0x1   :  { %2652 = sst [smem:[#allocation33_spill]] %s2606_s0 }
   0x2   :  { %2653 = sst [smem:[#allocation34_spill]] %s2607_s1 }
   0x3   :  { %2654 = sst [smem:[#allocation35_spill]] %s2608_s2 }
   0x4   :  { %7 = vsyncpa [#allocation5], 0 }
   0x5   :  { %8 = vsyncpa [#allocation3], 0 }
   0x6   :  { %9 = vsyncpa [#allocation4], 0 }
   0x7   :  { %11 = vsyncpa [#allocation4 + $0x1], 0  ;;  %s1524_s9 = smov 0   ;;  %s1526_s10 = smov 0  }
   0x8   :  { %s1528_s11 = smov 0   ;;  %s1530_s12 = smov 0  }
   0x9 LB: > { %2655 = sst [smem:[#allocation11_spill]] %s1488_s9  ;;  %s1545_s13 = sadd.s32 4294967295, %s1500_s12   ;;  %s1500_s12 = sphi %s1530_s12, %s2742_s12   ;;  %s1496_s11 = sphi %s1528_s11, %s2745_s11   ;;  %s1492_s10 = sphi %s1526_s10, %s2744_s10   ;;  %s1488_s9 = sphi %s1524_s9, %s2743_s9  }
   0xa   : > { %2656 = sst [smem:[#allocation12_spill]] %s1492_s10  ;;  %s1274_s14 = sadd.s32 4294967294, %s1500_s12  }
   0xb   : > { %2657 = sst [smem:[#allocation13_spill]] %s1496_s11  ;;  %s1549_s15 = sadd.s32 1, %s1500_s12  }
   0xc   : > { %2658 = sst [smem:[#allocation14_spill]] %s1500_s12  ;;  %s66_s16 = sadd.s32 1, %s1496_s11 }
   0xd   : > { %2659 = sst [smem:[#allocation15_spill]] %s1545_s13  ;;  %s63_s17 = ssub.s32 %s1500_s12, %s1549_s15 }
   0xe   : > { %2660 = sst [smem:[#allocation16_spill]] %s1549_s15  ;;  %p76_p0 = scmp.ne.s32.totalorder %s1496_s11, %s1492_s10 }
   0xf   : > { %p64_p1 = scmp.eq.s32.totalorder %s63_s17, 0  ;;  %p77_p2 = scmp.eq.s32.totalorder %s1545_s13, 1 }
  0x10   : > { %p82_p3 = scmp.ne.s32.totalorder %s1492_s10, %s1488_s9  ;;  %p83_p4 = scmp.eq.s32.totalorder %s1274_s14, 1 }
  0x11   : > { %s1560_s18 = scalar_select %p64_p1, %s1496_s11, %s66_s16  }
  0x12   : > { %p1562_p5 = por %p77_p2, %p76_p0  ;;  %p1566_p6 = por %p83_p4, %p82_p3 }
  0x13   : > { %2661 = sst [smem:[#allocation17_spill]] %s1560_s18  ;;  %p1275_p7 = scmp.ge.s32.totalorder %s1500_s12, 1 }
  0x14   : > { %s2662_s19 = scalar_select %p1562_p5, 1, 0 }
  0x15   : > { %s2664_s20 = scalar_select %p1566_p6, 1, 0 }
  0x16   : > { %2663 = sst [smem:[#allocation18_spill]] %s2662_s19  ;;  %p90_p8 = scmp.lt.s32.totalorder %s1500_s12, 3 }
  0x17   : > { %2665 = sst [smem:[#allocation19_spill]] %s2664_s20  ;;  %p2609_p10 = scmp.eq.s32.totalorder %s1545_s13, 0 }
  0x18   : > { %p1572_p9 = pnand %p1275_p7, %p90_p8  ;;  %s1502_s22 = smov [#allocation6]  }
  0x19   : > { %s111_s23 = sshll.u32 %s1502_s22, 4  ;;  %s2668_s0 = sld [smem:[#allocation33_spill]]  ;;  %s1585_s23 = int_to_ptr.vmem [resolvable:$true] %s111_s23 }
  0x1a   : > { %p1315_p11 = pneg %p1572_p9 }
  0x1c   : > { %p1581_p12 = pnand %p2609_p10, %p1315_p11 }
  0x1e   : > { %p1391_p0 = pneg %p1581_p12 }
  0x1f   : > { %s1389_s27 = scalar_lea.hbm %s2668_s0, 32 }
  0x20   : > { %p1390_p13 = scmp.ne.s32.totalorder %s2668_s0, %s1389_s27  ;;  %p1396_p3 = scmp.lt.u32.totalorder %s1389_s27, %s2668_s0 }
  0x22   : > { %p1392_p1 = pnand %p1391_p0, %p1390_p13 }
  0x24   : > { %p1393_p2 = pneg %p1392_p1 }
  0x26   : > { %p1398_p4 = pnand %p1396_p3, %p1393_p2 }
  0x28   : > { %1401 = shalt.err (!%p1398_p4)
}
  0x29   : > { %s1503_s4 = smov [#allocation2]   ;;  %s2669_s1 = sld [smem:[#allocation34_spill]] }
  0x2a   : > { %1318 = dma.hbm_to_smem (!%p1581_p12), %s2668_s0, 32, %s1503_s4, [#allocation5]  }
  0x2f   : > { %s1402_s14 = scalar_lea.hbm %s2669_s1, 2048 }
  0x30   : > { %p1403_p7 = scmp.ne.s32.totalorder %s2669_s1, %s1402_s14  ;;  %p1409_p13 = scmp.lt.u32.totalorder %s1402_s14, %s2669_s1 }
  0x32   : > { %p1405_p8 = pnand %p1403_p7, %p1391_p0 }
  0x34   : > { %p1406_p11 = pneg %p1405_p8 }
  0x36   : > { %p1411_p1 = pnand %p1409_p13, %p1406_p11 }
  0x38   : > { %1414 = shalt.err (!%p1411_p1)
}
  0x39   : > { %s1415_s26 = scalar_lea.vmem %s1585_s23, 2048  ;;  %p1423_p10 = scmp.lt.s32.totalorder %s1585_s23, %s1585_s23 }
  0x3a   : > { %p1416_p2 = scmp.ne.s32.totalorder %s1585_s23, %s1415_s26  ;;  %p1424_p7 = scmp.lt.s32.totalorder %s1415_s26, %s1415_s26 }
  0x3c   : > { %p1418_p3 = pnand %p1416_p2, %p1391_p0  ;;  %p1425_p8 = por %p1424_p7, %p1423_p10 }
  0x3e   : > { %p1419_p4 = pneg %p1418_p3 }
  0x40   : > { %p1426_p6 = pnand %p1425_p8, %p1419_p4 }
  0x42   : > { %1429 = shalt.err (!%p1426_p6)
}
  0x43   : > { %s1504_s27 = smov 1024   ;;  %s1505_s28 = smov 64  }
  0x44   : > { %1321 = dma.hbm_to_vmem [thread:$0]  (!%p1581_p12), %s2669_s1, 2048, %s1585_s23, [#allocation3], %s1504_s27, %s1504_s27, %s1505_s28  }
  0x45   : > { %127 = sbr.rel (%p1572_p9) target bundleno = 383 (0x17f), region = 28 }
  0x4c   : > { %p2670_p0 = scmp.eq.s32.totalorder %s1545_s13, 0 }
  0x4e   : > { %1475 = dma.done.wait (%p2670_p0), [#allocation5], 32   ;;  %p2671_p11 = pmov %p2670_p0 }
  0x4f   : > { %p2672_p6 = pmov %p2670_p0 }
  0x50   : > { %1477 = vsyncadd (%p2671_p11), [#allocation5], 4294967264 }
  0x51   : > { %1479 = dma.done.wait (%p2672_p6), [#allocation3], 2048   ;;  %p2673_p10 = pmov %p2670_p0 }
  0x53   : > { %1481 = vsyncadd (%p2673_p10), [#allocation3], 4294965248 }
  0x54   : > { %137 = sfence }
  0x55   : > { %v149_v0 = vld [vmem:[#allocation6] ss:$8 sm:$0xf]  ;;  %v153_v2 = vld [vmem:[#allocation6 + $0x1] ss:$8 sm:$0xf]  ;;  %v252_v61 = vlaneseq }
  0x56   : > { %v150_v1 = vld [vmem:[#allocation6] ss:$8 sm:$0xf0]  ;;  %s1642_s23 = sshll.u32 %s1545_s13, 7  ;;  %vm292_vm1 = vcmask 1040384  }
  0x57   : > { %v154_v3 = vld [vmem:[#allocation6 + $0x1] ss:$8 sm:$0xf0]  ;;  %s436_s21 = sadd.s32 10, %s1642_s23  ;;  %s438_s24 = sadd.s32 11, %s1642_s23  ;;  %v1656_v8 = vor.u32 %v150_v1, %v149_v0 }
  0x58   : > { %v157_v4 = vld [vmem:[#allocation6 + $0x2] ss:$8 sm:$0xf]  ;;  %s1646_s3 = sld [smem:[#allocation2 + %s436_s21]]  ;;  %s440_s5 = sadd.s32 12, %s1642_s23  ;;  %v1658_v9 = vor.u32 %v154_v3, %v153_v2 }
  0x59   : > { %v158_v5 = vld [vmem:[#allocation6 + $0x2] ss:$8 sm:$0xf0]  ;;  %s1648_s4 = sld [smem:[#allocation2 + %s438_s24]]  ;;  %s442_s6 = sadd.s32 13, %s1642_s23 }
  0x5a   : > { %v161_v6 = vld [vmem:[#allocation6 + $0x3] ss:$8 sm:$0xf]  ;;  %s1652_s7 = sld [smem:[#allocation2 + %s440_s5]]  ;;  %s204_s16 = sadd.s32 1, %s1642_s23  ;;  %v1667_v10 = vor.u32 %v158_v5, %v157_v4 }
  0x5b   : > { %v162_v7 = vld [vmem:[#allocation6 + $0x3] ss:$8 sm:$0xf0]  ;;  %s1654_s8 = sld [smem:[#allocation2 + %s442_s6]]  ;;  %s206_s22 = sadd.s32 2, %s1642_s23 }
  0x5c   : > { %s1661_s14 = sld [smem:[#allocation2 + %s1642_s23]]  ;;  %v1669_v11 = vor.u32 %v162_v7, %v161_v6  ;;  %s208_s26 = sadd.s32 3, %s1642_s23  ;;  %v165_v29 = vld [vmem:[#allocation6 + $0x4] ss:$8 sm:$0xf]  ;;  %v253_v7 = vshrl.u32 %v252_v61, 7 }
  0x5d   : > { %s1664_s17 = sld [smem:[#allocation2 + %s204_s16]]  ;;  %s553_s28 = sadd.s32 15, %s1642_s23  ;;  %v166_v34 = vld [vmem:[#allocation6 + $0x4] ss:$8 sm:$0xf0] }
  0x5e   : > { %s1671_s25 = sld [smem:[#allocation2 + %s206_s22]]  ;;  %v455_v12 = vstv %s1646_s3  ;;  %s555_s30 = sadd.s32 16, %s1642_s23  ;;  %v1748_v44 = vor.u32 %v166_v34, %v165_v29  ;;  %v177_v58 = vld [vmem:[#allocation6 + $0x7] ss:$8 sm:$0xf]  ;;  %v1830_v29 = vsub.s32 1, %v253_v7 }
  0x5f   : > { %v462_v13 = vstv %s1648_s4  ;;  %s1676_s27 = sld [smem:[#allocation2 + %s208_s26]]  ;;  %v456_v14 = vmax.f32 %v1656_v8, %v455_v12  ;;  %s557_s6 = sadd.s32 17, %s1642_s23  ;;  %v178_v60 = vld [vmem:[#allocation6 + $0x7] ss:$8 sm:$0xf0]  ;;  %v1839_v34 = vsub.s32 4, %v253_v7 }
  0x60   : > { %2674 = sst [smem:[#allocation20_spill]] %s1652_s7  ;;  %v463_v15 = vmax.f32 %v1658_v9, %v462_v13  ;;  %v453_v16 = vstv %s1652_s7  ;;  %s321_s18 = sadd.s32 6, %s1642_s23  ;;  %v198_v0 = vld [vmem:[#allocation6 + $0x44] ss:$8 sm:$0xf]  ;;  %v179_v5 = vor.u32 %v178_v60, %v177_v58 }
  0x61   : > { %2675 = sst [smem:[#allocation21_spill]] %s1654_s8  ;;  %v460_v17 = vstv %s1654_s8  ;;  %v454_v18 = vmin.f32 %v1667_v10, %v453_v16  ;;  %v199_v1 = vld [vmem:[#allocation6 + $0x44] ss:$8 sm:$0xf0]  ;;  %s787_s20 = sadd.s32 25, %s1642_s23 }
  0x62   : > { %s1685_s29 = sld [smem:[#allocation2 + %s553_s28]]  ;;  %s444_s21 = ssub.f32 %s1652_s7, %s1646_s3  ;;  %v461_v19 = vmin.f32 %v1669_v11, %v460_v17  ;;  %v221_v20 = vstv %s1661_s14  ;;  %v200_v6 = vor.u32 %v199_v1, %v198_v0  ;;  %vm1814_vm0 = vcmp.gt.f32.partialorder %v179_v5, 0.5 }
  0x63   : > { %s1692_s24 = sld [smem:[#allocation2 + %s555_s30]]  ;;  %s446_s5 = ssub.f32 %s1654_s8, %s1648_s4  ;;  %v222_v21 = vmax.f32 %v1656_v8, %v221_v20  ;;  %v228_v22 = vstv %s1664_s17  ;;  %v457_v23 = vsub.f32 %v454_v18, %v456_v14 }
  0x64   : > { %s1704_s16 = sadd.f32 1.0, %s444_s21  ;;  %s1710_s22 = sld [smem:[#allocation2 + %s557_s6]]  ;;  %v464_v24 = vsub.f32 %v461_v19, %v463_v15  ;;  %v219_v25 = vstv %s1671_s25  ;;  %v229_v26 = vmax.f32 %v1658_v9, %v228_v22  ;;  %vm1824_vm2 = vcmp.gt.f32.partialorder %v200_v6, 0.5 }
  0x65   : > { %s447_s26 = sadd.f32 1.0, %s446_s5  ;;  %s559_s28 = sadd.s32 18, %s1642_s23  ;;  %v220_v27 = vmin.f32 %v1667_v10, %v219_v25  ;;  %v226_v28 = vstv %s1676_s27  ;;  %v458_v30 = vadd.f32 1.0, %v457_v23 }
  0x66   : > { %p449_p9 = scmp.eq.f32.partialorder %s1704_s16, 1.0  ;;  %s210_s30 = ssub.f32 %s1671_s25, %s1661_s14  ;;  %v465_v31 = vadd.f32 1.0, %v464_v24  ;;  %v227_v32 = vmin.f32 %v1669_v11, %v226_v28 }
  0x67   : > { %s448_s21 = smul.f32 %s447_s26, %s1704_s16  ;;  %p450_p12 = scmp.eq.f32.partialorder %s447_s26, 1.0  ;;  %v223_v35 = vsub.f32 %v220_v27, %v222_v21  ;;  %v459_v36 = vmax.f32 %v458_v30, 0.0  ;;  %v1828_v27 = vsub.s32 0, %v253_v7 }
  0x68   : > { %2676 = sst [smem:[#allocation22_spill]] %s1685_s29  ;;  %v572_v33 = vstv %s1685_s29  ;;  %v466_v37 = vmax.f32 %v465_v31, 0.0  ;;  %v230_v38 = vsub.f32 %v227_v32, %v229_v26  ;;  %v1835_v31 = vsub.s32 2, %v253_v7  ;;  %s676_s2 = sadd.s32 23, %s1642_s23 }
  0x69   : > { %2677 = sst [smem:[#allocation23_spill]] %s1692_s24  ;;  %p1735_p13 = pnand %p450_p12, %p449_p9  ;;  %v573_v39 = vmax.f32 %v1656_v8, %v572_v33  ;;  %v468_v40 = vstv %s448_s21  ;;  %v224_v41 = vadd.f32 1.0, %v223_v35  ;;  %v579_v43 = vstv %s1692_s24 }
  0x6a   : > { %2678 = sst [smem:[#allocation24_spill]] %s1710_s22  ;;  %v570_v42 = vstv %s1710_s22  ;;  %v1750_v45 = vmul.f32 %v466_v37, %v459_v36  ;;  %v231_v46 = vadd.f32 1.0, %v230_v38  ;;  %s319_s21 = sadd.s32 5, %s1642_s23  ;;  %v580_v52 = vmax.f32 %v1658_v9, %v579_v43 }
  0x6b   : > { %s1729_s5 = sadd.f32 1.0, %s210_s30  ;;  %s1731_s6 = sld [smem:[#allocation2 + %s559_s28]]  ;;  %v571_v47 = vmin.f32 %v1667_v10, %v570_v42  ;;  %v225_v48 = vmax.f32 %v224_v41, 0.0  ;;  %v1837_v32 = vsub.s32 3, %v253_v7 }
  0x6c   : > { %s212_s0 = ssub.f32 %s1676_s27, %s1664_s17  ;;  %v469_v49 = vsub.f32 %v468_v40, %v1750_v45  ;;  %v232_v50 = vmax.f32 %v231_v46, 0.0  ;;  %s1784_s15 = sld [smem:[#allocation2 + %s321_s18]] }
  0x6d   : > { %s561_s28 = ssub.f32 %s1710_s22, %s1685_s29  ;;  %p215_p1 = scmp.eq.f32.partialorder %s1729_s5, 1.0  ;;  %v574_v51 = vsub.f32 %v571_v47, %v573_v39 }
  0x6e   : > { %s1757_s30 = sadd.f32 1.0, %s212_s0  ;;  %v470_v54 = vadd.f32 %v469_v49, %v1748_v44  ;;  %v1772_v55 = vmul.f32 %v232_v50, %v225_v48  ;;  %s323_s18 = sadd.s32 7, %s1642_s23  ;;  %v1860_v48 = vsub.s32 5, %v253_v7  ;;  %v1862_v49 = vsub.s32 6, %v253_v7 }
  0x6f   : > { %s1762_s1 = sadd.f32 1.0, %s561_s28  ;;  %v575_v56 = vadd.f32 1.0, %v574_v51  ;;  %s1779_s28 = sld [smem:[#allocation2 + %s319_s21]]  ;;  %v1867_v51 = vsub.s32 7, %v253_v7 }
  0x70   : > { %s214_s16 = smul.f32 %s1757_s30, %s1729_s5  ;;  %p216_p2 = scmp.eq.f32.partialorder %s1757_s30, 1.0  ;;  %1369 = vrcp.f32 %v470_v54 }
  0x71   : > { %2679 = sst [smem:[#allocation25_spill]] %s1731_s6  ;;  %v2651_v53 = vstv %s1731_s6  ;;  %p566_p3 = scmp.eq.f32.partialorder %s1762_s1, 1.0  ;;  %v576_v3 = vmax.f32 %v575_v56, 0.0 }
  0x72   : > { %s563_s0 = ssub.f32 %s1731_s6, %s1692_s24  ;;  %v578_v57 = vmin.f32 %v1669_v11, %v2651_v53  ;;  %v234_v59 = vstv %s214_s16  ;;  %p1790_p4 = pnand %p216_p2, %p215_p1  ;;  %v345_v24 = vstv %s1784_s15 }
  0x73   : > { %v235_v62 = vsub.f32 %v234_v59, %v1772_v55  ;;  %s1804_s30 = sld [smem:[#allocation2 + %s323_s18]]  ;;  %v346_v39 = vmax.f32 %v1658_v9, %v345_v24  ;;  %s791_s18 = sadd.s32 27, %s1642_s23 }
  0x74   : > { %s564_s11 = sadd.f32 1.0, %s563_s0  ;;  %v581_v63 = vsub.f32 %v578_v57, %v580_v52  ;;  %s325_s0 = sadd.s32 8, %s1642_s23 }
  0x75   : > { %v236_v2 = vadd.f32 %v235_v62, %v1748_v44  ;;  %s1283_s9 = scalar_select %p1790_p4, 0, 1  ;;  %v338_v19 = vstv %s1779_s28 }
  0x76   : > { %s565_s21 = smul.f32 %s564_s11, %s1762_s1  ;;  %p567_p7 = scmp.eq.f32.partialorder %s564_s11, 1.0  ;;  %v582_v4 = vadd.f32 1.0, %v581_v63  ;;  %v339_v35 = vmax.f32 %v1656_v8, %v338_v19 }
  0x77   : > { %1371 = vrcp.f32 %v236_v2  ;;  %s1806_s11 = sld [smem:[#allocation2 + %s325_s0]]  ;;  %v240_v41 = vstv %s1283_s9  ;;  %s793_s5 = sadd.s32 28, %s1642_s23 }
  0x78   : > { %p1800_p8 = pnand %p567_p7, %p566_p3  ;;  %v583_v14 = vmax.f32 %v582_v4, 0.0  ;;  %v585_v15 = vstv %s565_s21  ;;  %s1822_s21 = sld [smem:[#allocation2 + %s787_s20]]  ;;  %vm241_vm4 = vcmp.eq.s32.totalorder %v240_v41, 1 }
  0x79   : > { %s2685_s1 = scalar_select %p1735_p13, 0, 1  ;;  %v336_v38 = vstv %s1804_s30 }
  0x7a   : > { %v1811_v18 = vmul.f32 %v583_v14, %v576_v3  ;;  %s1286_s26 = scalar_select %p1800_p8, 0, 1  ;;  %v1370_v36 = vpop.eup %1369  ;;  %v337_v46 = vmin.f32 %v1667_v10, %v336_v38 }
  0x7b   : > { %v474_v23 = vstv %s2685_s1  ;;  %s789_s20 = sadd.s32 26, %s1642_s23  ;;  %s327_s16 = ssub.f32 %s1804_s30, %s1779_s28  ;;  %v472_v40 = vmul.f32 %v1370_v36, %v1750_v45 }
  0x7c   : > { %v586_v30 = vsub.f32 %v585_v15, %v1811_v18  ;;  %vm475_vm3 = vcmp.eq.s32.totalorder %v474_v23, 1  ;;  %v340_v52 = vsub.f32 %v337_v46, %v339_v35  ;;  %s1870_s9 = sld [smem:[#allocation2 + %s789_s20]]  ;;  %v1882_v58 = vstv %s1286_s26  ;;  %s1021_s13 = sadd.s32 35, %s1642_s23 }
  0x7d   : > { %s329_s0 = ssub.f32 %s1806_s11, %s1784_s15  ;;  %v343_v47 = vstv %s1806_s11  ;;  %v476_v45 = vsel %vm475_vm3, 0.0, %v472_v40  ;;  %s1872_s1 = sld [smem:[#allocation2 + %s791_s18]]  ;;  %vm592_vm5 = vcmp.eq.s32.totalorder %v1882_v58, 1 }
  0x7e   : > { %2686 = sst [smem:[#allocation26_spill]] %s1822_s21  ;;  %v587_v37 = vadd.f32 %v586_v30, %v1748_v44  ;;  %v344_v50 = vmin.f32 %v1669_v11, %v343_v47  ;;  %v2646_v54 = vstv %s1822_s21  ;;  %v1877_v57 = vsel %vm1824_vm2, -1.0, %v476_v45  ;;  %s670_s18 = sadd.s32 20, %s1642_s23 }
  0x7f   : > { %s1884_s12 = sadd.f32 1.0, %s327_s16  ;;  %v1889_v60 = vsel %vm1814_vm0, %v1877_v57, -10.0  ;;  %v1894_v62 = vadd.f32 1.0, %v340_v52  ;;  %v1899_v63 = vmax.f32 %v1656_v8, %v2646_v54  ;;  %s1931_s16 = sld [smem:[#allocation2 + %s793_s5]] }
  0x80   : > { %1373 = vrcp.f32 %v587_v37  ;;  %v347_v59 = vsub.f32 %v344_v50, %v346_v39  ;;  %s1892_s20 = sadd.f32 1.0, %s329_s0  ;;  %v489_v0 = vrot.slane %v1889_v60, %v1828_v27  ;;  %v493_v1 = vrot.slane %v1889_v60, %v1830_v29  ;;  %s674_s5 = sadd.s32 22, %s1642_s23 }
  0x81   : > { %v1372_v56 = vpop.eup %1371  ;;  %v497_v2 = vrot.slane %v1889_v60, %v1835_v31  ;;  %v505_v3 = vrot.slane %v1889_v60, %v1839_v34  ;;  %v509_v4 = vrot.slane %v1889_v60, %v1860_v48  ;;  %v513_v5 = vrot.slane %v1889_v60, %v1862_v49  ;;  %p332_p0 = scmp.eq.f32.partialorder %s1884_s12, 1.0  ;;  %s1986_s19 = sld [smem:[#allocation2 + %s674_s5]] }
  0x82   : > { %2689 = sst [smem:[#allocation27_spill]] %s1870_s9  ;;  %v238_v61 = vmul.f32 %v1372_v56, %v1772_v55  ;;  %v501_v55 = vrot.slane %v1889_v60, %v1837_v32  ;;  %v517_v6 = vrot.slane %v1889_v60, %v1867_v51  ;;  %v526_v7 = vsel %vm292_vm1, %v489_v0, -inf  ;;  %s331_s26 = smul.f32 %s1892_s20, %s1884_s12 }
  0x83   : > { %2690 = sst [smem:[#allocation28_spill]] %s1872_s1  ;;  %v527_v14 = vsel %vm292_vm1, %v493_v1, -inf  ;;  %v528_v15 = vsel %vm292_vm1, %v497_v2, -inf  ;;  %v530_v30 = vsel %vm292_vm1, %v505_v3, -inf  ;;  %v532_v35 = vsel %vm292_vm1, %v509_v4, -inf  ;;  %p333_p11 = scmp.eq.f32.partialorder %s1892_s20, 1.0 }
  0x84   : > { %v529_v23 = vsel %vm292_vm1, %v501_v55, -inf  ;;  %v534_v36 = vsel %vm292_vm1, %v513_v5, -inf  ;;  %v536_v37 = vsel %vm292_vm1, %v517_v6, -inf  ;;  %v531_v39 = vmax.f32 %v526_v7, %v530_v30  ;;  %s1965_s12 = sld [smem:[#allocation2 + %s670_s18]]  ;;  %s672_s20 = sadd.s32 21, %s1642_s23 }
  0x85   : > { %v533_v40 = vmax.f32 %v527_v14, %v532_v35  ;;  %v535_v46 = vmax.f32 %v528_v15, %v534_v36  ;;  %v537_v50 = vmax.f32 %v529_v23, %v536_v37  ;;  %2691 = sst [smem:[#allocation29_spill]] %s1931_s16  ;;  %v242_v45 = vsel %vm241_vm4, 0.0, %v238_v61  ;;  %p1952_p6 = pnand %p333_p11, %p332_p0 }
  0x86   : > { %v348_v52 = vadd.f32 1.0, %v347_v59  ;;  %v2640_v56 = vstv %s1872_s1  ;;  %v2645_v0 = vstv %s1870_s9  ;;  %v1939_v3 = vsel %vm1824_vm2, -1.0, %v242_v45  ;;  %s797_s18 = ssub.f32 %s1931_s16, %s1870_s9  ;;  %s1995_s5 = sld [smem:[#allocation2 + %s672_s20]] }
  0x87   : > { %v538_v2 = vmax.f32 %v531_v39, %v533_v40  ;;  %v539_v55 = vmax.f32 %v535_v46, %v537_v50  ;;  %v342_v4 = vmax.f32 %v1894_v62, 0.0  ;;  %v1945_v41 = vsel %vm1814_vm0, %v1939_v3, -10.0  ;;  %2694 = sst [smem:[#allocation31_spill]] %s1986_s19  ;;  %s908_s24 = sadd.s32 32, %s1642_s23 }
  0x88   : > { %v349_v61 = vmax.f32 %v348_v52, 0.0  ;;  %v1956_v5 = vstv %s331_s26  ;;  %v255_v6 = vrot.slane %v1945_v41, %v1828_v27  ;;  %v263_v7 = vrot.slane %v1945_v41, %v1835_v31  ;;  %s795_s26 = ssub.f32 %s1872_s1, %s1822_s21  ;;  %s1997_s10 = sld [smem:[#allocation2 + %s676_s2]] }
  0x89   : > { %v540_v62 = vmax.f32 %v538_v2, %v539_v55  ;;  %v267_v14 = vrot.slane %v1945_v41, %v1837_v32  ;;  %v271_v15 = vrot.slane %v1945_v41, %v1839_v34  ;;  %v275_v23 = vrot.slane %v1945_v41, %v1860_v48  ;;  %s1023_s2 = sadd.s32 36, %s1642_s23  ;;  %s2025_s1 = sadd.f32 1.0, %s797_s18 }
  0x8a   : > { %v1374_v1 = vpop.eup %1373  ;;  %2693 = sst [smem:[#allocation30_spill]] %s1965_s12  ;;  %v279_v30 = vrot.slane %v1945_v41, %v1862_v49  ;;  %v283_v35 = vrot.slane %v1945_v41, %v1867_v51  ;;  %v293_v36 = vsel %vm292_vm1, %v255_v6, -inf  ;;  %v295_v39 = vsel %vm292_vm1, %v263_v7, -inf  ;;  %s1027_s18 = sadd.s32 38, %s1642_s23 }
  0x8b   : > { %v589_v59 = vmul.f32 %v1374_v1, %v1811_v18  ;;  %v259_v18 = vrot.slane %v1945_v41, %v1830_v29  ;;  %541 = vmax.xlane.f32.xlu1 %v540_v62  ;;  %v296_v40 = vsel %vm292_vm1, %v267_v14, -inf  ;;  %v297_v46 = vsel %vm292_vm1, %v271_v15, -inf  ;;  %s2011_s20 = sadd.f32 1.0, %s795_s26  ;;  %s1025_s26 = sadd.s32 37, %s1642_s23 }
  0x8c   : > { %v299_v50 = vsel %vm292_vm1, %v275_v23, -inf  ;;  %v301_v45 = vsel %vm292_vm1, %v279_v30, -inf  ;;  %v298_v52 = vmax.f32 %v293_v36, %v297_v46  ;;  %v303_v55 = vsel %vm292_vm1, %v283_v35, -inf  ;;  %s2037_s9 = sld [smem:[#allocation2 + %s1021_s13]]  ;;  %s678_s21 = ssub.f32 %s1986_s19, %s1965_s12 }
  0x8d   : > { %v294_v37 = vsel %vm292_vm1, %v259_v18, -inf  ;;  %v302_v2 = vmax.f32 %v295_v39, %v301_v45  ;;  %v304_v62 = vmax.f32 %v296_v40, %v303_v55  ;;  %v593_v6 = vsel %vm592_vm5, 0.0, %v589_v59  ;;  %s2048_s6 = sld [smem:[#allocation2 + %s1023_s2]]  ;;  %p800_p10 = scmp.eq.f32.partialorder %s2011_s20, 1.0 }
  0x8e   : > { %v300_v1 = vmax.f32 %v294_v37, %v299_v50  ;;  %2695 = sst [smem:[#allocation32_spill]] %s1997_s10  ;;  %v2001_v18 = vmul.f32 %v349_v61, %v342_v4  ;;  %v805_v7 = vmin.f32 %v1667_v10, %v2640_v56  ;;  %v2009_v15 = vsel %vm1824_vm2, -1.0, %v593_v6  ;;  %p801_p9 = scmp.eq.f32.partialorder %s2025_s1, 1.0 }
  0x8f   : > { %v2638_v23 = vstv %s1931_s16  ;;  %v814_v58 = vmax.f32 %v1658_v9, %v2645_v0  ;;  %v306_v59 = vmax.f32 %v302_v2, %v304_v62  ;;  %v2021_v4 = vsel %vm1814_vm0, %v2009_v15, -10.0  ;;  %s680_s13 = ssub.f32 %s1997_s10, %s1995_s5  ;;  %s2057_s22 = sld [smem:[#allocation2 + %s1025_s26]] }
  0x90   : > { %v305_v14 = vmax.f32 %v298_v52, %v300_v1  ;;  %v352_v61 = vsub.f32 %v1956_v5, %v2001_v18  ;;  %v808_v30 = vsub.f32 %v805_v7, %v1899_v63  ;;  %v606_v35 = vrot.slane %v2021_v4, %v1828_v27  ;;  %s2063_s2 = sld [smem:[#allocation2 + %s1027_s18]]  ;;  %s904_s18 = sadd.s32 30, %s1642_s23 }
  0x91   : > { %v610_v36 = vrot.slane %v2021_v4, %v1830_v29  ;;  %v614_v37 = vrot.slane %v2021_v4, %v1835_v31  ;;  %v618_v39 = vrot.slane %v2021_v4, %v1837_v32  ;;  %v622_v63 = vrot.slane %v2021_v4, %v1839_v34  ;;  %s2076_s29 = sadd.f32 1.0, %s678_s21  ;;  %s2079_s26 = sld [smem:[#allocation2 + %s908_s24]] }
  0x92   : > { %v307_v5 = vmax.f32 %v305_v14, %v306_v59  ;;  %v626_v40 = vrot.slane %v2021_v4, %v1860_v48  ;;  %v630_v46 = vrot.slane %v2021_v4, %v1862_v49  ;;  %v634_v50 = vrot.slane %v2021_v4, %v1867_v51  ;;  %s2081_s16 = sadd.f32 1.0, %s680_s13  ;;  %s910_s8 = sadd.s32 33, %s1642_s23 }
  0x93   : > { %v643_v45 = vsel %vm292_vm1, %v606_v35, -inf  ;;  %v644_v52 = vsel %vm292_vm1, %v610_v36, -inf  ;;  %v645_v1 = vsel %vm292_vm1, %v614_v37, -inf  ;;  %v646_v2 = vsel %vm292_vm1, %v618_v39, -inf  ;;  %s2091_s21 = sld [smem:[#allocation2 + %s904_s18]]  ;;  %p2113_p12 = pnand %p801_p9, %p800_p10 }
  0x94   : > { %308 = vmax.xlane.f32.xlu0 %v307_v5  ;;  %v647_v55 = vsel %vm292_vm1, %v622_v63, -inf  ;;  %v649_v62 = vsel %vm292_vm1, %v626_v40, -inf  ;;  %v651_v6 = vsel %vm292_vm1, %v630_v46, -inf  ;;  %v653_v35 = vsel %vm292_vm1, %v634_v50, -inf  ;;  %s2696_s7 = scalar_select %p1952_p6, 0, 1 }
  0x95   : > { %v648_v7 = vmax.f32 %v643_v45, %v647_v55  ;;  %v650_v14 = vmax.f32 %v644_v52, %v649_v62  ;;  %v652_v59 = vmax.f32 %v645_v1, %v651_v6  ;;  %v654_v36 = vmax.f32 %v646_v2, %v653_v35  ;;  %s1029_s24 = ssub.f32 %s2057_s22, %s2037_s9  ;;  %s2107_s18 = sld [smem:[#allocation2 + %s910_s8]] }
  0x96   : > { %v353_v37 = vadd.f32 %v352_v61, %v1748_v44  ;;  %v809_v39 = vadd.f32 1.0, %v808_v30  ;;  %v812_v5 = vmin.f32 %v1669_v11, %v2638_v23  ;;  %v2648_v40 = vstv %s1986_s19  ;;  %s1031_s13 = ssub.f32 %s2063_s2, %s2048_s6  ;;  %s906_s19 = sadd.s32 31, %s1642_s23 }
  0x97   : > { %v655_v63 = vmax.f32 %v648_v7, %v650_v14  ;;  %v656_v61 = vmax.f32 %v652_v59, %v654_v36  ;;  %v688_v50 = vmin.f32 %v1667_v10, %v2648_v40  ;;  %v2650_v45 = vstv %s1965_s12  ;;  %s2698_s12 = smul.f32 %s2025_s1, %s2011_s20  ;;  %s2123_s23 = sadd.f32 1.0, %s1029_s24 }
  0x98   : > { %1375 = vrcp.f32 %v353_v37  ;;  %v815_v30 = vsub.f32 %v812_v5, %v814_v58  ;;  %v810_v46 = vmax.f32 %v809_v39, 0.0  ;;  %v2647_v52 = vstv %s1997_s10  ;;  %s682_s8 = smul.f32 %s2081_s16, %s2076_s29  ;;  %s2137_s1 = sadd.f32 1.0, %s1031_s13 }
  0x99   : > { %v657_v58 = vmax.f32 %v655_v63, %v656_v61  ;;  %v690_v2 = vmax.f32 %v1656_v8, %v2650_v45  ;;  %v695_v55 = vmin.f32 %v1669_v11, %v2647_v52  ;;  %v357_v62 = vstv %s2696_s7  ;;  %s2131_s7 = sld [smem:[#allocation2 + %s906_s19]]  ;;  %p683_p13 = scmp.eq.f32.partialorder %s2076_s29, 1.0 }
  0x9a   : > { %v816_v1 = vadd.f32 1.0, %v815_v30  ;;  %v2649_v6 = vstv %s1995_s5  ;;  %v2635_v7 = vstv %s2057_s22  ;;  %v819_v59 = vstv %s2698_s12  ;;  %s1288_s19 = scalar_select %p2113_p12, 0, 1 }
  0x9b   : > { %658 = vmax.xlane.f32.xlu1 %v657_v58  ;;  %v691_v35 = vsub.f32 %v688_v50, %v690_v2  ;;  %v697_v36 = vmax.f32 %v1658_v9, %v2649_v6  ;;  %v1039_v37 = vmin.f32 %v1667_v10, %v2635_v7  ;;  %v2637_v39 = vstv %s2037_s9  ;;  %s1033_s10 = smul.f32 %s2137_s1, %s2123_s23  ;;  %p684_p1 = scmp.eq.f32.partialorder %s2081_s16, 1.0 }
  0x9c   : > { %v817_v14 = vmax.f32 %v816_v1, 0.0  ;;  %v2636_v5 = vstv %s2063_s2  ;;  %v2639_v63 = vstv %s2048_s6  ;;  %v1041_v58 = vmax.f32 %v1656_v8, %v2637_v39  ;;  %p1034_p2 = scmp.eq.f32.partialorder %s2123_s23, 1.0  ;;  %p1035_p3 = scmp.eq.f32.partialorder %s2137_s1, 1.0 }
  0x9d   : > { %v692_v30 = vadd.f32 1.0, %v691_v35  ;;  %v698_v50 = vsub.f32 %v695_v55, %v697_v36  ;;  %v1046_v1 = vmin.f32 %v1669_v11, %v2636_v5  ;;  %v1048_v2 = vmax.f32 %v1658_v9, %v2639_v63  ;;  %s912_s0 = ssub.f32 %s2079_s26, %s2091_s21  ;;  %p2214_p4 = pnand %p684_p1, %p683_p13 }
  0x9e   : > { %v2133_v61 = vmul.f32 %v817_v14, %v810_v46  ;;  %v2642_v46 = vstv %s2079_s26  ;;  %v1042_v36 = vsub.f32 %v1039_v37, %v1041_v58  ;;  %vm358_vm6 = vcmp.eq.s32.totalorder %v357_v62, 1  ;;  %p2226_p7 = pnand %p1035_p3, %p1034_p2  ;;  %s2707_s17 = sld [smem:[#allocation25_spill]] }
  0x9f   : > { %v693_v55 = vmax.f32 %v692_v30, 0.0  ;;  %v699_v35 = vadd.f32 1.0, %v698_v50  ;;  %v1049_v7 = vsub.f32 %v1046_v1, %v1048_v2  ;;  %v922_v5 = vmin.f32 %v1667_v10, %v2642_v46  ;;  %s914_s12 = ssub.f32 %s2107_s18, %s2131_s7  ;;  %s2708_s25 = sld [smem:[#allocation30_spill]] }
  0xa0   : > { %v820_v14 = vsub.f32 %v819_v59, %v2133_v61  ;;  %v2644_v39 = vstv %s2091_s21  ;;  %v702_v56 = vstv %s682_s8  ;;  %v1043_v30 = vadd.f32 1.0, %v1042_v36  ;;  %s2230_s29 = sadd.f32 1.0, %s912_s0  ;;  %s2709_s27 = sld [smem:[#allocation31_spill]] }
  0xa1   : > { %v700_v59 = vmax.f32 %v699_v35, 0.0  ;;  %v1050_v37 = vadd.f32 1.0, %v1049_v7  ;;  %v924_v58 = vmax.f32 %v1656_v8, %v2644_v39  ;;  %v2641_v1 = vstv %s2107_s18  ;;  %s2236_s16 = sadd.f32 1.0, %s914_s12  ;;  %s2710_s28 = sld [smem:[#allocation32_spill]] }
  0xa2   : > { %v1376_v23 = vpop.eup %1375  ;;  %v821_v63 = vadd.f32 %v820_v14, %v1748_v44  ;;  %v825_v10 = vstv %s1288_s19  ;;  %v1044_v14 = vmax.f32 %v1043_v30, 0.0  ;;  %v2643_v8 = vstv %s2131_s7  ;;  %s1287_s13 = scalar_select %p2214_p4, 0, 1 }
  0xa3   : > { %v355_v50 = vmul.f32 %v1376_v23, %v2001_v18  ;;  %v2165_v2 = vmul.f32 %v700_v59, %v693_v55  ;;  %v1051_v18 = vmax.f32 %v1050_v37, 0.0  ;;  %v925_v23 = vsub.f32 %v922_v5, %v924_v58  ;;  %s1290_s23 = scalar_select %p2226_p7, 0, 1 }
  0xa4   : > { %1377 = vrcp.f32 %v821_v63  ;;  %v1053_v55 = vstv %s1033_s10  ;;  %v929_v62 = vmin.f32 %v1669_v11, %v2641_v1  ;;  %vm826_vm7 = vcmp.eq.s32.totalorder %v825_v10, 1  ;;  %s916_s8 = smul.f32 %s2236_s16, %s2230_s29  ;;  %p917_p8 = scmp.eq.f32.partialorder %s2230_s29, 1.0 }
  0xa5   : > { %v359_v35 = vsel %vm358_vm6, 0.0, %v355_v50  ;;  %v703_v63 = vsub.f32 %v702_v56, %v2165_v2  ;;  %v2187_v5 = vmul.f32 %v1051_v18, %v1044_v14  ;;  %v926_v59 = vadd.f32 1.0, %v925_v23  ;;  %p918_p0 = scmp.eq.f32.partialorder %s2236_s16, 1.0  ;;  %s2711_s15 = sld [smem:[#allocation26_spill]] }
  0xa6   : > { %v2173_v7 = vsel %vm1824_vm2, -1.0, %v359_v35  ;;  %v931_v56 = vmax.f32 %v1658_v9, %v2643_v8  ;;  %vm244_vm11 = vcmp.gt.f32.partialorder %v1939_v3, -1e+30  ;;  %s2712_s30 = sld [smem:[#allocation27_spill]]  ;;  %s2713_s11 = sld [smem:[#allocation28_spill]] }
  0xa7   : > { %v2185_v36 = vsel %vm1814_vm0, %v2173_v7, -10.0  ;;  %v704_v52 = vadd.f32 %v703_v63, %v1748_v44  ;;  %p2285_p11 = pnand %p918_p0, %p917_p8  ;;  %s2714_s24 = sld [smem:[#allocation29_spill]] }
  0xa8   : > { %v372_v30 = vrot.slane %v2185_v36, %v1828_v27  ;;  %v376_v11 = vrot.slane %v2185_v36, %v1830_v29  ;;  %v380_v50 = vrot.slane %v2185_v36, %v1835_v31  ;;  %v384_v37 = vrot.slane %v2185_v36, %v1837_v32  ;;  %s2727_s3 = sld [smem:[#allocation12_spill]] }
  0xa9   : > { %v388_v58 = vrot.slane %v2185_v36, %v1839_v34  ;;  %v392_v14 = vrot.slane %v2185_v36, %v1860_v48  ;;  %v396_v9 = vrot.slane %v2185_v36, %v1862_v49  ;;  %v400_v35 = vrot.slane %v2185_v36, %v1867_v51  ;;  %s1289_s19 = scalar_select %p2285_p11, 0, 1 }
  0xaa   : > { %v409_v18 = vsel %vm292_vm1, %v372_v30, -inf  ;;  %v410_v23 = vsel %vm292_vm1, %v376_v11, -inf  ;;  %v411_v1 = vsel %vm292_vm1, %v380_v50, -inf  ;;  %v412_v46 = vsel %vm292_vm1, %v384_v37, -inf }
  0xab   : > { %v413_v8 = vsel %vm292_vm1, %v388_v58, -inf  ;;  %v415_v39 = vsel %vm292_vm1, %v392_v14, -inf  ;;  %v417_v30 = vsel %vm292_vm1, %v396_v9, -inf  ;;  %v419_v11 = vsel %vm292_vm1, %v400_v35, -inf }
  0xac   : > { %v414_v50 = vmax.f32 %v409_v18, %v413_v8  ;;  %v416_v37 = vmax.f32 %v410_v23, %v415_v39  ;;  %v418_v0 = vmax.f32 %v411_v1, %v417_v30  ;;  %v420_v54 = vmax.f32 %v412_v46, %v419_v11 }
  0xad   : > { %v1054_v58 = vsub.f32 %v1053_v55, %v2187_v5  ;;  %v932_v14 = vsub.f32 %v929_v62, %v931_v56  ;;  %v927_v39 = vmax.f32 %v926_v59, 0.0  ;;  %1379 = vrcp.f32 %v704_v52 }
  0xae   : > { %v1378_v40 = vpop.eup %1377  ;;  %v421_v6 = vmax.f32 %v414_v50, %v416_v37  ;;  %v422_v9 = vmax.f32 %v418_v0, %v420_v54  ;;  %v708_v0 = vstv %s1287_s13  ;;  %v1059_v52 = vstv %s1290_s23  ;;  %s146_s4 = sand.u32 1, %s2727_s3   ;;  %s1508_s23 = smov [#allocation7]  }
  0xaf   : > { %v823_v8 = vmul.f32 %v1378_v40, %v2133_v61  ;;  %v1055_v46 = vadd.f32 %v1054_v58, %v1748_v44  ;;  %v933_v1 = vadd.f32 1.0, %v932_v14  ;;  %v936_v61 = vstv %s916_s8  ;;  %s1189_s16 = scalar_lea.sflag [#allocation4], %s146_s4  ;;  %s1434_s8 = sshll.u32 %s1508_s23, 4  ;;  %s1435_s8 = int_to_ptr.vmem [resolvable:$false] %s1434_s8 }
  0xb0   : > { %v423_v63 = vmax.f32 %v421_v6, %v422_v9  ;;  %vm709_vm8 = vcmp.eq.s32.totalorder %v708_v0, 1  ;;  %vm1060_vm9 = vcmp.eq.s32.totalorder %v1059_v52, 1  ;;  %s1436_s1 = scalar_lea.vmem %s1435_s8, 2048 }
  0xb1   : > { %v827_v35 = vsel %vm826_vm7, 0.0, %v823_v8  ;;  %1381 = vrcp.f32 %v1055_v46  ;;  %v934_v55 = vmax.f32 %v933_v1, 0.0 }
  0xb2   : > { %424 = vmax.xlane.f32.xlu0 %v423_v63  ;;  %v2250_v54 = vsel %vm1824_vm2, -1.0, %v827_v35 }
  0xb3   : > { %v2257_v40 = vsel %vm1814_vm0, %v2250_v54, -10.0  ;;  %v2259_v6 = vmul.f32 %v934_v55, %v927_v39 }
  0xb4   : > { %v840_v10 = vrot.slane %v2257_v40, %v1828_v27  ;;  %v844_v62 = vrot.slane %v2257_v40, %v1830_v29  ;;  %v848_v59 = vrot.slane %v2257_v40, %v1835_v31  ;;  %v852_v56 = vrot.slane %v2257_v40, %v1837_v32 }
  0xb5   : > { %v856_v18 = vrot.slane %v2257_v40, %v1839_v34  ;;  %v860_v23 = vrot.slane %v2257_v40, %v1860_v48  ;;  %v864_v30 = vrot.slane %v2257_v40, %v1862_v49  ;;  %v868_v11 = vrot.slane %v2257_v40, %v1867_v51 }
  0xb6   : > { %v877_v50 = vsel %vm292_vm1, %v840_v10, -inf  ;;  %v878_v37 = vsel %vm292_vm1, %v844_v62, -inf  ;;  %v879_v58 = vsel %vm292_vm1, %v848_v59, -inf  ;;  %v880_v14 = vsel %vm292_vm1, %v852_v56, -inf }
  0xb7   : > { %v881_v9 = vsel %vm292_vm1, %v856_v18, -inf  ;;  %v883_v39 = vsel %vm292_vm1, %v860_v23, -inf  ;;  %v885_v8 = vsel %vm292_vm1, %v864_v30, -inf  ;;  %v887_v46 = vsel %vm292_vm1, %v868_v11, -inf  ;;  %v1380_v10 = vpop.eup %1379 }
  0xb8   : > { %v882_v1 = vmax.f32 %v877_v50, %v881_v9  ;;  %v884_v63 = vmax.f32 %v878_v37, %v883_v39  ;;  %v886_v35 = vmax.f32 %v879_v58, %v885_v8  ;;  %v888_v55 = vmax.f32 %v880_v14, %v887_v46 }
  0xb9   : > { %v937_v62 = vsub.f32 %v936_v61, %v2259_v6  ;;  %v706_v45 = vmul.f32 %v1380_v10, %v2165_v2  ;;  %v942_v61 = vstv %s1289_s19 }
  0xba   : > { %v889_v59 = vmax.f32 %v882_v1, %v884_v63  ;;  %v890_v56 = vmax.f32 %v886_v35, %v888_v55  ;;  %vm943_vm10 = vcmp.eq.s32.totalorder %v942_v61, 1 }
  0xbb   : > { %v1382_v18 = vpop.eup %1381  ;;  %v938_v23 = vadd.f32 %v937_v62, %v1748_v44  ;;  %v710_v11 = vsel %vm709_vm8, 0.0, %v706_v45 }
  0xbc   : > { %v891_v30 = vmax.f32 %v889_v59, %v890_v56  ;;  %v1057_v50 = vmul.f32 %v1382_v18, %v2187_v5  ;;  %v2301_v37 = vsel %vm1824_vm2, -1.0, %v710_v11 }
  0xbd   : > { %v2306_v0 = vsel %vm1814_vm0, %v2301_v37, -10.0  ;;  %1383 = vrcp.f32 %v938_v23 }
  0xbe   : > { %892 = vmax.xlane.f32.xlu1 %v891_v30  ;;  %v1061_v2 = vsel %vm1060_vm9, 0.0, %v1057_v50  ;;  %v723_v44 = vrot.slane %v2306_v0, %v1828_v27  ;;  %v727_v45 = vrot.slane %v2306_v0, %v1830_v29  ;;  %v731_v5 = vrot.slane %v2306_v0, %v1835_v31 }
  0xbf   : > { %v735_v52 = vrot.slane %v2306_v0, %v1837_v32  ;;  %v739_v58 = vrot.slane %v2306_v0, %v1839_v34  ;;  %v743_v14 = vrot.slane %v2306_v0, %v1860_v48  ;;  %v747_v9 = vrot.slane %v2306_v0, %v1862_v49 }
  0xc0   : > { %v751_v39 = vrot.slane %v2306_v0, %v1867_v51  ;;  %v760_v8 = vsel %vm292_vm1, %v723_v44, -inf  ;;  %v761_v46 = vsel %vm292_vm1, %v727_v45, -inf  ;;  %v762_v1 = vsel %vm292_vm1, %v731_v5, -inf }
  0xc1   : > { %v763_v63 = vsel %vm292_vm1, %v735_v52, -inf  ;;  %v764_v35 = vsel %vm292_vm1, %v739_v58, -inf  ;;  %v766_v55 = vsel %vm292_vm1, %v743_v14, -inf  ;;  %v768_v10 = vsel %vm292_vm1, %v747_v9, -inf }
  0xc2   : > { %v770_v62 = vsel %vm292_vm1, %v751_v39, -inf  ;;  %v765_v59 = vmax.f32 %v760_v8, %v764_v35  ;;  %v767_v56 = vmax.f32 %v761_v46, %v766_v55  ;;  %v769_v18 = vmax.f32 %v762_v1, %v768_v10 }
  0xc3   : > { %v771_v23 = vmax.f32 %v763_v63, %v770_v62  ;;  %v2334_v30 = vsel %vm1824_vm2, -1.0, %v1061_v2 }
  0xc4   : > { %v772_v11 = vmax.f32 %v765_v59, %v767_v56  ;;  %v2339_v44 = vsel %vm1814_vm0, %v2334_v30, -10.0 }
  0xc5   : > { %v773_v50 = vmax.f32 %v769_v18, %v771_v23  ;;  %v1074_v45 = vrot.slane %v2339_v44, %v1828_v27  ;;  %v1078_v5 = vrot.slane %v2339_v44, %v1830_v29  ;;  %v1082_v52 = vrot.slane %v2339_v44, %v1835_v31 }
  0xc6   : > { %v1086_v2 = vrot.slane %v2339_v44, %v1837_v32  ;;  %v1090_v14 = vrot.slane %v2339_v44, %v1839_v34  ;;  %v1094_v9 = vrot.slane %v2339_v44, %v1860_v48  ;;  %v1098_v39 = vrot.slane %v2339_v44, %v1862_v49 }
  0xc7   : > { %v774_v58 = vmax.f32 %v772_v11, %v773_v50  ;;  %v1384_v8 = vpop.eup %1383  ;;  %v1102_v46 = vrot.slane %v2339_v44, %v1867_v51  ;;  %v1111_v1 = vsel %vm292_vm1, %v1074_v45, -inf  ;;  %v1112_v63 = vsel %vm292_vm1, %v1078_v5, -inf }
  0xc8   : > { %v1113_v35 = vsel %vm292_vm1, %v1082_v52, -inf  ;;  %v1114_v55 = vsel %vm292_vm1, %v1086_v2, -inf  ;;  %v1115_v10 = vsel %vm292_vm1, %v1090_v14, -inf  ;;  %v1117_v62 = vsel %vm292_vm1, %v1094_v9, -inf }
  0xc9   : > { %775 = vmax.xlane.f32.xlu0 %v774_v58  ;;  %v1119_v59 = vsel %vm292_vm1, %v1098_v39, -inf  ;;  %v1116_v56 = vmax.f32 %v1111_v1, %v1115_v10  ;;  %v1118_v18 = vmax.f32 %v1112_v63, %v1117_v62  ;;  %v1121_v11 = vsel %vm292_vm1, %v1102_v46, -inf }
  0xca   : > { %v1120_v23 = vmax.f32 %v1113_v35, %v1119_v59  ;;  %v1122_v50 = vmax.f32 %v1114_v55, %v1121_v11  ;;  %v940_v45 = vmul.f32 %v1384_v8, %v2259_v6  ;;  %v245_v6 = vsel %vm244_vm11, %v1939_v3, -1e+30 }
  0xcb   : > { %v1123_v5 = vmax.f32 %v1116_v56, %v1118_v18  ;;  %vm361_vm12 = vcmp.gt.f32.partialorder %v2173_v7, %v245_v6  ;;  %v246_v18 = vsel %vm244_vm11, %v221_v20, 0.0  ;;  %v248_v11 = vsel %vm244_vm11, %v219_v25, 0.0 }
  0xcc   : > { %v1124_v53 = vmax.f32 %v1120_v23, %v1122_v50  ;;  %v944_v52 = vsel %vm943_vm10, 0.0, %v940_v45  ;;  %v247_v23 = vsel %vm244_vm11, %v228_v22, 0.0  ;;  %v249_v50 = vsel %vm244_vm11, %v226_v28, 0.0 }
  0xcd   : > { %v2369_v2 = vsel %vm1824_vm2, -1.0, %v944_v52  ;;  %v362_v45 = vsel %vm361_vm12, %v2173_v7, %v245_v6  ;;  %v364_v52 = vsel %vm361_vm12, %v345_v24, %v247_v23  ;;  %v365_v22 = vsel %vm361_vm12, %v336_v38, %v248_v11 }
  0xce   : > { %v1125_v58 = vmax.f32 %v1123_v5, %v1124_v53  ;;  %v2375_v14 = vsel %vm1814_vm0, %v2369_v2, -10.0  ;;  %v363_v5 = vsel %vm361_vm12, %v338_v19, %v246_v18  ;;  %vm478_vm13 = vcmp.gt.f32.partialorder %v1877_v57, %v362_v45 }
  0xcf   : > { %v957_v61 = vrot.slane %v2375_v14, %v1828_v27  ;;  %v961_v26 = vrot.slane %v2375_v14, %v1830_v29  ;;  %v965_v9 = vrot.slane %v2375_v14, %v1835_v31  ;;  %v969_v53 = vrot.slane %v2375_v14, %v1837_v32 }
  0xd0   : > { %1126 = vmax.xlane.f32.xlu1 %v1125_v58  ;;  %v973_v39 = vrot.slane %v2375_v14, %v1839_v34  ;;  %v977_v8 = vrot.slane %v2375_v14, %v1860_v48  ;;  %v981_v46 = vrot.slane %v2375_v14, %v1862_v49  ;;  %v985_v1 = vrot.slane %v2375_v14, %v1867_v51 }
  0xd1   : > { %v994_v29 = vsel %vm292_vm1, %v957_v61, -inf  ;;  %v995_v31 = vsel %vm292_vm1, %v961_v26, -inf  ;;  %v996_v32 = vsel %vm292_vm1, %v965_v9, -inf  ;;  %v997_v34 = vsel %vm292_vm1, %v969_v53, -inf }
  0xd2   : > { %v998_v48 = vsel %vm292_vm1, %v973_v39, -inf  ;;  %v1000_v49 = vsel %vm292_vm1, %v977_v8, -inf  ;;  %v1002_v63 = vsel %vm292_vm1, %v981_v46, -inf  ;;  %v1004_v51 = vsel %vm292_vm1, %v985_v1, -inf }
  0xd3   : > { %v999_v35 = vmax.f32 %v994_v29, %v998_v48  ;;  %v1001_v55 = vmax.f32 %v995_v31, %v1000_v49  ;;  %v1003_v10 = vmax.f32 %v996_v32, %v1002_v63  ;;  %v1005_v62 = vmax.f32 %v997_v34, %v1004_v51 }
  0xd4   : > { %v366_v58 = vsel %vm361_vm12, %v343_v47, %v249_v50  ;;  %v479_v25 = vsel %vm478_vm13, %v1877_v57, %v362_v45  ;;  %v480_v28 = vsel %vm478_vm13, %v455_v12, %v363_v5  ;;  %v481_v19 = vsel %vm478_vm13, %v462_v13, %v364_v52  ;;  %v169_v5 = vld [vmem:[#allocation6 + $0x5] ss:$8 sm:$0xf] }
  0xd5   : > { %v1006_v59 = vmax.f32 %v999_v35, %v1001_v55  ;;  %v1007_v56 = vmax.f32 %v1003_v10, %v1005_v62  ;;  %v482_v3 = vsel %vm478_vm13, %v453_v16, %v365_v22  ;;  %v483_v24 = vsel %vm478_vm13, %v460_v17, %v366_v58  ;;  %v170_v52 = vld [vmem:[#allocation6 + $0x5] ss:$8 sm:$0xf0]  ;;  %v173_v22 = vld [vmem:[#allocation6 + $0x6] ss:$8 sm:$0xf] }
  0xd6   : > { %vm595_vm14 = vcmp.gt.f32.partialorder %v2009_v15, %v479_v25  ;;  %v2715_v7 = vstv %s2707_s17  ;;  %v2716_v17 = vstv %s2708_s25  ;;  %v2718_v26 = vstv %s2709_s27  ;;  %v174_v58 = vld [vmem:[#allocation6 + $0x6] ss:$8 sm:$0xf0] }
  0xd7   : > { %v1008_v20 = vmax.f32 %v1006_v59, %v1007_v56  ;;  %v596_v38 = vsel %vm595_vm14, %v2009_v15, %v479_v25  ;;  %v597_v47 = vsel %vm595_vm14, %v572_v33, %v480_v28  ;;  %v598_v57 = vsel %vm595_vm14, %v579_v43, %v481_v19  ;;  %v182_v25 = vld [vmem:[#allocation6 + $0x40] ss:$8 sm:$0xf] }
  0xd8   : > { %v599_v12 = vsel %vm595_vm14, %v570_v42, %v482_v3  ;;  %v600_v13 = vsel %vm595_vm14, %v2715_v7, %v483_v24  ;;  %vm712_vm15 = vcmp.gt.f32.partialorder %v2301_v37, %v596_v38  ;;  %v2717_v15 = vstv %s1995_s5  ;;  %v183_v28 = vld [vmem:[#allocation6 + $0x40] ss:$8 sm:$0xf0] }
  0xd9   : > { %1009 = vmax.xlane.f32.xlu0 %v1008_v20  ;;  %v713_v16 = vsel %vm712_vm15, %v2301_v37, %v596_v38  ;;  %v714_v6 = vsel %vm712_vm15, %v2716_v17, %v597_v47  ;;  %v715_v61 = vsel %vm712_vm15, %v2717_v15, %v598_v57  ;;  %v716_v33 = vsel %vm712_vm15, %v2718_v26, %v599_v12  ;;  %v186_v38 = vld [vmem:[#allocation6 + $0x41] ss:$8 sm:$0xf] }
  0xda   : > { %v2719_v43 = vstv %s2710_s28  ;;  %vm829_vm1 = vcmp.gt.f32.partialorder %v2250_v54, %v713_v16  ;;  %v2720_v53 = vstv %s2711_s15  ;;  %v2721_v37 = vstv %s2712_s30  ;;  %v187_v47 = vld [vmem:[#allocation6 + $0x41] ss:$8 sm:$0xf0] }
  0xdb   : > { %v717_v42 = vsel %vm712_vm15, %v2719_v43, %v600_v13  ;;  %v830_v9 = vsel %vm829_vm1, %v2250_v54, %v713_v16  ;;  %v831_v39 = vsel %vm829_vm1, %v2720_v53, %v714_v6  ;;  %v832_v8 = vsel %vm829_vm1, %v2721_v37, %v715_v61  ;;  %v191_v43 = vld [vmem:[#allocation6 + $0x42] ss:$8 sm:$0xf0]  ;;  %v194_v53 = vld [vmem:[#allocation6 + $0x43] ss:$8 sm:$0xf] }
  0xdc   : > { %v2722_v46 = vstv %s2713_s11  ;;  %v2723_v29 = vstv %s2714_s24  ;;  %vm946_vm2 = vcmp.gt.f32.partialorder %v2369_v2, %v830_v9  ;;  %v2724_v34 = vstv %s2091_s21 }
  0xdd   : > { %v833_v1 = vsel %vm829_vm1, %v2722_v46, %v716_v33  ;;  %v834_v31 = vsel %vm829_vm1, %v2723_v29, %v717_v42  ;;  %v947_v32 = vsel %vm946_vm2, %v2369_v2, %v830_v9  ;;  %v948_v48 = vsel %vm946_vm2, %v2724_v34, %v831_v39  ;;  %v190_v33 = vld [vmem:[#allocation6 + $0x42] ss:$8 sm:$0xf]  ;;  %v195_v39 = vld [vmem:[#allocation6 + $0x43] ss:$8 sm:$0xf0] }
  0xde   : > { %v2725_v49 = vstv %s2131_s7  ;;  %v2726_v51 = vstv %s2079_s26  ;;  %v2728_v54 = vstv %s2107_s18  ;;  %vm2481_vm3 = vcmp.gt.f32.partialorder %v2334_v30, %v947_v32  ;;  %s2737_s7 = sld [smem:[#allocation35_spill]] }
  0xdf   : > { %v949_v63 = vsel %vm946_vm2, %v2725_v49, %v832_v8  ;;  %v950_v35 = vsel %vm946_vm2, %v2726_v51, %v833_v1  ;;  %v951_v55 = vsel %vm946_vm2, %v2728_v54, %v834_v31  ;;  %v2731_v62 = vstv %s2037_s9  ;;  %s2735_s9 = sld [smem:[#allocation15_spill]] }
  0xe0   : > { %v1065_v59 = vsel %vm2481_vm3, %v2731_v62, %v948_v48  ;;  %v2732_v56 = vstv %s2048_s6  ;;  %v2733_v18 = vstv %s2057_s22  ;;  %v2734_v11 = vstv %s2063_s2  ;;  %s1281_s22 = sshll.u32 %s146_s4, 6 }
  0xe1   : > { %v1066_v2 = vsel %vm2481_vm3, %v2732_v56, %v949_v63  ;;  %v1067_v23 = vsel %vm2481_vm3, %v2733_v18, %v950_v35  ;;  %v1068_v50 = vsel %vm2481_vm3, %v2734_v11, %v951_v55  ;;  %v171_v24 = vor.u32 %v170_v52, %v169_v5  ;;  %s2509_s6 = scalar_lea.vmem [#allocation7], %s1281_s22 }
  0xe2   : > { %v1144_v45 = vsub.f32 %v1067_v23, %v1065_v59  ;;  %v1146_v20 = vsub.f32 %v1068_v50, %v1066_v2  ;;  %v175_v57 = vor.u32 %v174_v58, %v173_v22  ;;  %v2507_v13 = vsel %vm2481_vm3, %v2334_v30, %v947_v32  ;;  %s1203_s26 = sshll.u32 %s2509_s6, 4  ;;  %s2560_s26 = int_to_ptr.vmem [resolvable:$true] %s1203_s26 }
  0xe3   : > { %v184_v16 = vor.u32 %v183_v28, %v182_v25  ;;  %v188_v17 = vor.u32 %v187_v47, %v186_v38  ;;  %v1506_v30 = vmov 0.0   ;;  %v192_v46 = vor.u32 %v191_v43, %v190_v33  ;;  %s1430_s13 = scalar_lea.vmem %s2560_s26, 1024  ;;  %p1437_p12 = scmp.lt.s32.totalorder %s2560_s26, %s1435_s8 }
  0xe4   : > { %v1145_v19 = vadd.f32 1.0, %v1144_v45  ;;  %v1147_v3 = vadd.f32 1.0, %v1146_v20  ;;  %1180 = vst [vmem:[%s2509_s6] sm:$0xe0] %v1506_v30  ;;  %1181 = vst [vmem:[%s2509_s6 + $0x8] sm:$0xe0] %v1506_v30  ;;  %v196_v29 = vor.u32 %v195_v39, %v194_v53  ;;  %p1431_p6 = scmp.ne.s32.totalorder %s2560_s26, %s1430_s13  ;;  %p1438_p13 = scmp.lt.s32.totalorder %s1436_s1, %s1430_s13 }
  0xe5   : > { %1182 = vst [vmem:[%s2509_s6 + $0x10] sm:$0xe0] %v1506_v30  ;;  %1183 = vst [vmem:[%s2509_s6 + $0x18] sm:$0xe0] %v1506_v30  ;;  %s1304_s2 = sshll.u32 %s2735_s9, 10 }
  0xe6   : > { %v1148_v12 = vmul.f32 0.5, %v1145_v19  ;;  %v1150_v7 = vmul.f32 0.5, %v1147_v3  ;;  %1385 = vlog2.f32 %v1145_v19  ;;  %1184 = vst [vmem:[%s2509_s6 + $0x20] sm:$0xe0] %v1506_v30  ;;  %1185 = vst [vmem:[%s2509_s6 + $0x28] sm:$0xe0] %v1506_v30  ;;  %s2558_s29 = scalar_lea.hbm %s2737_s7, %s1304_s2  ;;  %p1432_p10 = pnand %p1431_p6, %p1562_p5 }
  0xe7   : > { %1387 = vlog2.f32 %v1147_v3  ;;  %1186 = vst [vmem:[%s2509_s6 + $0x30] sm:$0xe0] %v1506_v30  ;;  %1187 = vst [vmem:[%s2509_s6 + $0x38] sm:$0xe0] %v1506_v30  ;;  %p1439_p1 = por %p1438_p13, %p1437_p12 }
  0xe8   : > { %v1149_v6 = vadd.f32 %v1148_v12, %v1065_v59  ;;  %v1151_v15 = vadd.f32 %v1150_v7, %v1066_v2  ;;  %p1433_p9 = pneg %p1432_p10 }
  0xea   : > { %v1152_v61 = vsub.f32 %v1149_v6, %v171_v24  ;;  %v1154_v26 = vsub.f32 %v1151_v15, %v175_v57  ;;  %p1440_p2 = pnand %p1439_p1, %p1433_p9 }
  0xec   : > { %v1153_v42 = vmul.f32 %v1152_v61, %v184_v16  ;;  %v1155_v9 = vmul.f32 %v1154_v26, %v188_v17 }
  0xee   : > { %v1164_v37 = vsel %vm1814_vm0, %v1153_v42, 0.0  ;;  %v1168_v8 = vsel %vm1814_vm0, %v1155_v9, 0.0 }
  0xef   : > { %1291 = vst [vmem:[%s2509_s6 + $0x1] ss:$8 sm:$0xf] %v1164_v37  ;;  %1292 = vst [vmem:[%s2509_s6 + $0x1] ss:$8 sm:$0xf0] %v1164_v37 }
  0xf0   : > { %1293 = vst [vmem:[%s2509_s6 + $0x2] ss:$8 sm:$0xf] %v1168_v8  ;;  %1294 = vst [vmem:[%s2509_s6 + $0x2] ss:$8 sm:$0xf0] %v1168_v8  ;;  %v1386_v1 = vpop.eup %1385 }
  0xf1   : > { %v1388_v31 = vpop.eup %1387  ;;  %v1157_v32 = vmul.f32 0.6931472, %v1386_v1 }
  0xf2   : > { %v1160_v34 = vmul.f32 0.6931472, %v1388_v31 }
  0xf3   : > { %v1158_v48 = vsub.f32 %v1157_v32, %v192_v46 }
  0xf4   : > { %v1161_v49 = vsub.f32 %v1160_v34, %v196_v29 }
  0xf5   : > { %v1172_v63 = vsel %vm1814_vm0, %v1158_v48, 0.0 }
  0xf6   : > { %1295 = vst [vmem:[%s2509_s6 + $0x3] ss:$8 sm:$0xf] %v1172_v63  ;;  %1296 = vst [vmem:[%s2509_s6 + $0x3] ss:$8 sm:$0xf0] %v1172_v63 }
  0xf7   : > { %v1176_v51 = vsel %vm1814_vm0, %v1161_v49, 0.0 }
  0xf8   : > { %1297 = vst [vmem:[%s2509_s6 + $0x4] ss:$8 sm:$0xf] %v1176_v51  ;;  %1298 = vst [vmem:[%s2509_s6 + $0x4] ss:$8 sm:$0xf0] %v1176_v51 }
 0x118   : > { %v542_v54 = vpop.xlane.xlu1 %541 }
 0x119   : > { %vm543_vm6 = vcmp.eq.f32.partialorder %v542_v54, 0.0 }
 0x11a   : > { %v544_v23 = vsel %vm543_vm6, 1e-05, %v542_v54 }
 0x11b   : > { %v549_v50 = vrot.slane %v544_v23, %v1828_v27 }
 0x11d   : > { %vm551_vm14 = vcmp.eq.f32.partialorder %v1889_v60, %v549_v50 }
 0x121   : > { %v309_v35 = vpop.xlane.xlu0 %308 }
 0x122   : > { %vm310_vm5 = vcmp.eq.f32.partialorder %v309_v35, 0.0 }
 0x123   : > { %v311_v59 = vsel %vm310_vm5, 1e-05, %v309_v35 }
 0x124   : > { %v316_v11 = vrot.slane %v311_v59, %v1828_v27 }
 0x126   : > { %vm318_vm10 = vcmp.eq.f32.partialorder %v1945_v41, %v316_v11 }
 0x128   : > { %v659_v10 = vpop.xlane.xlu1 %658 }
 0x129   : > { %vm660_vm7 = vcmp.eq.f32.partialorder %v659_v10, 0.0 }
 0x12a   : > { %v661_v45 = vsel %vm660_vm7, 1e-05, %v659_v10  ;;  %vm1138_vm7 = vcmp.lt.f32.partialorder %v2507_v13, 0.3 }
 0x12b   : > { %v666_v52 = vrot.slane %v661_v45, %v1828_v27 }
 0x12d   : > { %vm668_vm1 = vcmp.eq.f32.partialorder %v2021_v4, %v666_v52  ;;  %v1507_v4 = vmov -1.0  }
 0x13f   : > { %v425_v55 = vpop.xlane.xlu0 %424 }
 0x140   : > { %vm426_vm4 = vcmp.eq.f32.partialorder %v425_v55, 0.0 }
 0x141   : > { %v427_v62 = vsel %vm426_vm4, 1e-05, %v425_v55 }
 0x142   : > { %v432_v2 = vrot.slane %v427_v62, %v1828_v27 }
 0x144   : > { %vm434_vm9 = vcmp.eq.f32.partialorder %v2185_v36, %v432_v2 }
 0x145   : > { %vm435_vm12 = vmor %vm318_vm10, %vm434_vm9 }
 0x146   : > { %vm552_vm15 = vmor %vm435_vm12, %vm551_vm14  ;;  %vm1141_vm12 = vcmp.ge.f32.partialorder %v2507_v13, 0.7 }
 0x147   : > { %vm669_vm2 = vmor %vm552_vm15, %vm668_vm1 }
 0x14b   : > { %v893_v56 = vpop.xlane.xlu1 %892 }
 0x14c   : > { %vm894_vm11 = vcmp.eq.f32.partialorder %v893_v56, 0.0 }
 0x14d   : > { %v895_v22 = vsel %vm894_vm11, 1e-05, %v893_v56 }
 0x14e   : > { %v900_v36 = vrot.slane %v895_v22, %v1828_v27 }
 0x150   : > { %vm902_vm5 = vcmp.eq.f32.partialorder %v2257_v40, %v900_v36 }
 0x156   : > { %v776_v18 = vpop.xlane.xlu0 %775 }
 0x157   : > { %vm777_vm8 = vcmp.eq.f32.partialorder %v776_v18, 0.0 }
 0x158   : > { %v778_v20 = vsel %vm777_vm8, 1e-05, %v776_v18 }
 0x159   : > { %v783_v58 = vrot.slane %v778_v20, %v1828_v27 }
 0x15b   : > { %vm785_vm3 = vcmp.eq.f32.partialorder %v2306_v0, %v783_v58  ;;  %v1139_v0 = vsel %vm1138_vm7, 0.0, %v1507_v4 }
 0x15c   : > { %vm786_vm6 = vmor %vm669_vm2, %vm785_vm3 }
 0x15d   : > { %v1127_v5 = vpop.xlane.xlu1 %1126  ;;  %vm903_vm9 = vmor %vm786_vm6, %vm902_vm5 }
 0x15e   : > { %vm1128_vm13 = vcmp.eq.f32.partialorder %v1127_v5, 0.0 }
 0x15f   : > { %v1129_v25 = vsel %vm1128_vm13, 1e-05, %v1127_v5 }
 0x160   : > { %v1134_v41 = vrot.slane %v1129_v25, %v1828_v27 }
 0x162   : > { %vm1136_vm8 = vcmp.eq.f32.partialorder %v2339_v44, %v1134_v41 }
 0x166   : > { %v1010_v28 = vpop.xlane.xlu0 %1009 }
 0x167   : > { %vm1011_vm4 = vcmp.eq.f32.partialorder %v1010_v28, 0.0 }
 0x168   : > { %v1012_v60 = vsel %vm1011_vm4, 1e-05, %v1010_v28 }
 0x169   : > { %v1017_v19 = vrot.slane %v1012_v60, %v1828_v27 }
 0x16b   : > { %vm1019_vm10 = vcmp.eq.f32.partialorder %v2375_v14, %v1017_v19 }
 0x16c   : > { %vm1020_vm11 = vmor %vm903_vm9, %vm1019_vm10 }
 0x16d   : > { %vm1137_vm13 = vmor %vm1020_vm11, %vm1136_vm8 }
 0x16e   : > { %v1140_v40 = vsel %vm1137_vm13, 1.0, %v1139_v0 }
 0x16f   : > { %v1142_v3 = vsel %vm1141_vm12, 1.0, %v1140_v40 }
 0x170   : > { %v1143_v27 = vsel %vm1814_vm0, %v1142_v3, -1.0 }
 0x171   : > { %1162 = vst [vmem:[%s2509_s6] ss:$8 sm:$0xf] %v1143_v27  ;;  %1163 = vst [vmem:[%s2509_s6] ss:$8 sm:$0xf0] %v1143_v27 }
 0x172   : > { %1443 = shalt.err (!%p1440_p2)
}
 0x173   : > { %s1444_s19 = scalar_lea.hbm %s2558_s29, 1024  ;;  %s1448_s12 = scalar_lea.hbm %s2737_s7, 2048 }
 0x174   : > { %p1445_p3 = scmp.ne.s32.totalorder %s2558_s29, %s1444_s19  ;;  %p1449_p8 = scmp.lt.u32.totalorder %s2558_s29, %s2737_s7 }
 0x175   : > { %p1450_p0 = scmp.lt.u32.totalorder %s1448_s12, %s1444_s19  ;;  %p1452_p6 = scmp.lt.u32.totalorder %s1444_s19, %s2558_s29 }
 0x176   : > { %p1446_p4 = pnand %p1445_p3, %p1562_p5 }
 0x177   : > { %p1451_p11 = por %p1450_p0, %p1449_p8 }
 0x178   : > { %p1447_p7 = pneg %p1446_p4 }
 0x179   : > { %p1453_p10 = por %p1452_p6, %p1451_p11 }
 0x17b   : > { %p1454_p9 = pnand %p1453_p10, %p1447_p7 }
 0x17d   : > { %1457 = shalt.err (!%p1454_p9)
}
 0x17e   : > { %1313 = dma.vmem_to_hbm [thread:$0]  (%p1562_p5), %s2560_s26, 1024, %s2558_s29, %s1189_s16  }
 0x17f PF: > { %s2738_s17 = sld [smem:[#allocation14_spill]]  ;;  %s2739_s25 = sld [smem:[#allocation11_spill]] }
 0x180   : > { %s2740_s27 = sld [smem:[#allocation19_spill]] }
 0x185   : > { %p1330_p12 = scmp.ge.s32.totalorder %s2738_s17, 2  ;;  %s1215_s28 = sand.u32 1, %s2739_s25  }
 0x186   : > { %p2741_p13 = scmp.ne.s32.totalorder %s2740_s27, 0  ;;  %s1216_s15 = scalar_lea.sflag [#allocation4], %s1215_s28 }
 0x188   : > { %p1323_p1 = pnand %p1330_p12, %p2741_p13 }
 0x18a   : > { %1483 = dma.done.wait (!%p1323_p1), %s1216_s15, 1024  }
 0x18b   : > { %1485 = vsyncadd (!%p1323_p1), %s1216_s15, 4294966272  ;;  %s2742_s12 = sld [smem:[#allocation16_spill]]  ;;  %s2743_s9 = sld [smem:[#allocation12_spill]] }
 0x18c   : > { %s2744_s10 = sld [smem:[#allocation13_spill]]  ;;  %s2745_s11 = sld [smem:[#allocation17_spill]] }
 0x191   : > { %p14_p2 = scmp.ge.s32.totalorder %s2742_s12, 4  }
 0x193   :  { %16 = sbr.rel (!%p14_p2) target bundleno = 9 (0x9), region = 86 }
 0x19a   :  { %1221 = vsyncpa [#allocation3], 1 }
 0x19b   :  { %1223 = vsyncpa [#allocation3 + $0x1], 1 }
 0x19c   :  { %1224 = vsyncpa [#allocation4], 1 }
 0x19d   :  { %1226 = vsyncpa [#allocation4 + $0x1], 1 }
 0x19e   :  { %1227 = vsyncpa [#allocation5], 1 }
 0x19f   :  { %1229 = vsyncpa [#allocation5 + $0x1], 1 }

</bundles_post_ra>
